<compile_context>
chip_gen: v6e
topology: v6e:2x2x1
jax: 0.10.0
libtpu: 0.0.40
codegen_flags: <defaults>
</compile_context>

<pallas_src>
import functools

import numpy as np
import jax
import jax.numpy as jnp
from jax import lax
from jax.experimental import pallas as pl
from jax.experimental.pallas import tpu as pltpu


_LANES = 128
_CHUNK_ROWS = 64                         # rows per in-kernel chunk (8 f32 vregs / array)
_ROW_ALIGN = 64                          # multiple of chunk rows, int8 (32) & f32 (8) tiling
_BLOCK_BUDGET_BYTES = 12 * 1024 * 1024   # double-buffered input blocks per grid step
_VMEM_LIMIT_BYTES = 32 * 1024 * 1024


def _round_up(x, m):
    return -(-x // m) * m


def _vreg_sum(mask, rows):
    """Sum a (rows, 128) boolean mask over rows with no cross-sublane (XLU) work:
    reshape to (rows//8, 8, 128) (layout-preserving) and add the (8,128) vreg slabs
    elementwise (pure VALU).  Returns (8, 128) float32 partial sums."""
    v = mask.astype(jnp.float32).reshape(rows // 8, 8, _LANES)
    return jnp.sum(v, axis=0)


def _dice_kernel(x_ref, t_ref, o_ref, tps_acc, pred_acc, tgt_acc, *,
                 C, Rt, eps, mean_scale):
    """Grid = (batch, spatial_tile).

    x_ref : (1, C, Rt, 128) logits, native dtype
    t_ref : (1, Rt, 128)    int8/int32 labels, -1 marks padded pixels
    o_ref : (1, 1, 1)       f32 mean dice over classes 1..C-1 (written at last tile only)
    *_acc : (C, 8, 128)     f32 per-class partial sums (VMEM scratch, persists over tiles)
    """
    s = pl.program_id(1)

    @pl.when(s == 0)
    def _init():
        tps_acc[...] = jnp.zeros_like(tps_acc)
        pred_acc[...] = jnp.zeros_like(pred_acc)
        tgt_acc[...] = jnp.zeros_like(tgt_acc)

    CH = _CHUNK_ROWS
    n_chunks = Rt // CH

    @pl.loop(0, n_chunks)
    def _chunk(i):
        r = pl.multiple_of(i * CH, CH)

        # ---- class argmax: unrolled running max / first-occurrence argmax (VPU only) ----
        # softmax is strictly monotonic, so argmax(softmax(x)) == argmax(x); later classes
        # only win on strict '>', reproducing torch.argmax first-occurrence tie-breaking.
        # Compares run in the logits' native dtype (bf16 stays packed on v6e/v7x).
        m = x_ref[0, 0, pl.ds(r, CH), :]                       # (CH, 128)
        pred = jnp.zeros((CH, _LANES), jnp.int32)
        for c in range(1, C):
            xc = x_ref[0, c, pl.ds(r, CH), :]
            upd = xc > m
            m = jnp.where(upd, xc, m)
            pred = jnp.where(upd, jnp.int32(c), pred)

        t = t_ref[0, pl.ds(r, CH), :].astype(jnp.int32)        # (CH, 128)
        # No padding mask on pred: padded logits are zero -> pred == 0 (tie-break), padded
        # labels are -1 -> never equal any class, and class 0 is excluded from the mean.

        # ---- per-class stats: accumulate (8,128) partial sums (scratch RMW per chunk
        #      is ~6 vreg ld/st per class, negligible vs the chunk's VALU work) ----
        for c in range(C):
            tgt_m = t == c
            pred_m = pred == c
            tps_m = jnp.logical_and(tgt_m, pred_m)
            tps_acc[c] += _vreg_sum(tps_m, CH)
            pred_acc[c] += _vreg_sum(pred_m, CH)
            tgt_acc[c] += _vreg_sum(tgt_m, CH)

    # ---- finalize: vectorized per-class dice, mean over classes 1..C-1, one tiny store ----
    @pl.when(s == pl.num_programs(1) - 1)
    def _finalize():
        tps = jnp.sum(jnp.sum(tps_acc[...], axis=1), axis=-1, keepdims=True)   # (C, 1)
        p = jnp.sum(jnp.sum(pred_acc[...], axis=1), axis=-1, keepdims=True)    # (C, 1)
        g = jnp.sum(jnp.sum(tgt_acc[...], axis=1), axis=-1, keepdims=True)     # (C, 1)
        # dice = 2*tps / (pred_count + tgt_count + eps) == 2*tps / (2*tps + fps + fns + eps)
        dice = (2.0 * tps) / (p + g + eps)
        cls = lax.broadcasted_iota(jnp.int32, (C, 1), 0)
        total = jnp.sum(jnp.where(cls >= 1, dice, 0.0), axis=0, keepdims=True)  # (1, 1)
        o_ref[0] = total * mean_scale


def dice_metric(inputs, targets, eps=1e-5, logits=True):
    """Pallas implementation of Dice_metric.forward.

    inputs : (N, C, *spatial) float logits (kept in native dtype on the wire)
    targets: (N, *spatial) integer class labels in [0, C)
    returns: (N,) float32 — mean dice over classes 1..C-1 per batch element
             (NaN when C == 1, same as the PyTorch reference)
    """
    if not logits:
        # TODO(synk): logits=False path of the reference is ambiguous (inputs treated as a
        # label map while categories = inputs.shape[1]); only logits=True is implemented.
        raise NotImplementedError("Only logits=True is supported.")

    N, C = int(inputs.shape[0]), int(inputs.shape[1])
    S = int(np.prod(inputs.shape[2:]))

    # ---- spatial tiling: S -> (rows x 128 lanes); rows per tile sized to a VMEM budget
    #      that scales with C and dtype (double-buffered logits + int8 labels) ----
    R = -(-S // _LANES)
    itemsize = np.dtype(inputs.dtype).itemsize
    bytes_per_row = 2 * _LANES * (C * itemsize + 1)          # dbl-buffered x block + labels
    rt_max = max(_ROW_ALIGN,
                 (_BLOCK_BUDGET_BYTES // bytes_per_row) // _ROW_ALIGN * _ROW_ALIGN)
    num_tiles = max(1, -(-R // rt_max))
    Rt = _round_up(-(-R // num_tiles), _ROW_ALIGN)           # rows per tile, chunk-aligned
    R_pad = Rt * num_tiles
    S_pad = R_pad * _LANES

    x = inputs.reshape(N, C, S)                              # keep native dtype (bf16-friendly)
    t = targets.reshape(N, S)
    if S_pad != S:
        # Zero-padded logits argmax to class 0; -1 labels never match any class.
        x = jnp.pad(x, ((0, 0), (0, 0), (0, S_pad - S)))
        t = jnp.pad(t, ((0, 0), (0, S_pad - S)), constant_values=-1)
    label_dtype = jnp.int8 if C <= 127 else jnp.int32        # int8 labels: 4x less HBM traffic
    x = x.reshape(N, C, R_pad, _LANES)
    t = t.reshape(N, R_pad, _LANES).astype(label_dtype)

    mean_scale = (1.0 / (C - 1)) if C > 1 else float("nan")  # C==1 -> NaN, like the reference

    out = pl.pallas_call(
        functools.partial(_dice_kernel, C=C, Rt=Rt, eps=float(eps), mean_scale=mean_scale),
        out_shape=jax.ShapeDtypeStruct((N, 1, 1), jnp.float32),
        grid=(N, num_tiles),
        in_specs=[
            pl.BlockSpec((1, C, Rt, _LANES), lambda n, s: (n, 0, s, 0)),
            pl.BlockSpec((1, Rt, _LANES), lambda n, s: (n, s, 0)),
        ],
        out_specs=pl.BlockSpec((1, 1, 1), lambda n, s: (n, 0, 0)),
        scratch_shapes=[pltpu.VMEM((C, 8, _LANES), jnp.float32)] * 3,
        compiler_params=pltpu.CompilerParams(
            dimension_semantics=("parallel", "arbitrary"),
            vmem_limit_bytes=_VMEM_LIMIT_BYTES),
    )(x, t)

    return out[:, 0, 0]


def _dice_metric_ref(inputs, targets, eps=1e-5):
    """Pure-JAX reference mirroring the PyTorch module exactly."""
    C = inputs.shape[1]
    tgt_oh = jax.nn.one_hot(targets, C, axis=1, dtype=jnp.float32)
    pred = jnp.argmax(jax.nn.softmax(inputs.astype(jnp.float32), axis=1), axis=1)
    pred_oh = jax.nn.one_hot(pred, C, axis=1, dtype=jnp.float32)
    dims = tuple(range(2, tgt_oh.ndim))
    tps = jnp.sum(pred_oh * tgt_oh, dims)
    fps = jnp.sum(pred_oh * (1.0 - tgt_oh), dims)
    fns = jnp.sum((1.0 - pred_oh) * tgt_oh, dims)
    dice = 2.0 * tps / (2.0 * tps + fps + fns + eps)
    return dice[:, 1:].mean(axis=1)


if __name__ == "__main__":
    key = jax.random.PRNGKey(0)
    k1, k2 = jax.random.split(key)

    N, C, H, W = 2, 4, 16, 16
    inputs = jax.random.normal(k1, (N, C, H, W), dtype=jnp.float32)
    targets = jax.random.randint(k2, (N, H, W), 0, C, dtype=jnp.int32)

    out = dice_metric(inputs, targets)
    out = jax.block_until_ready(out)

    ref = jax.block_until_ready(_dice_metric_ref(inputs, targets))
    assert out.shape == (N,)
    np.testing.assert_allclose(np.asarray(out), np.asarray(ref), rtol=1e-5, atol=1e-5)

    print("KERNEL_OK")
</pallas_src>

<mosaic_0001>
module attributes {stable_mosaic.version = 11 : i64} {
  func.func @_dice_kernel(%arg0: i32, %arg1: i32, %arg2: memref<1x4x64x128xf32, #tpu.memory_space<vmem>>, %arg3: memref<1x64x128xi8, #tpu.memory_space<vmem>>, %arg4: memref<1x1x1xf32, #tpu.memory_space<vmem>>, %arg5: memref<4x8x128xf32, #tpu.memory_space<vmem>>, %arg6: memref<4x8x128xf32, #tpu.memory_space<vmem>>, %arg7: memref<4x8x128xf32, #tpu.memory_space<vmem>>) attributes {dimension_semantics = [#tpu.dimension_semantics<parallel>, #tpu.dimension_semantics<arbitrary>], iteration_bounds = array<i64: 2, 1>, scalar_prefetch = 0 : i64, scratch_operands = 3 : i64, tpu.core_type = #tpu.core_type<tc>, window_params = [{transform_indices = @transform_0, window_bounds = array<i64: 1, 4, 64, 128>}, {transform_indices = @transform_1, window_bounds = array<i64: 1, 64, 128>}, {transform_indices = @transform_2, window_bounds = array<i64: 1, 1, 1>}]} {
    %c0_i32 = arith.constant 0 : i32
    %0 = arith.cmpi eq, %arg1, %c0_i32 : i32
    %1 = arith.extui %0 : i1 to i32
    %c0_i32_0 = arith.constant 0 : i32
    %2 = arith.cmpi ne, %1, %c0_i32_0 : i32
    scf.if %2 {
      %cst_109 = arith.constant 0.000000e+00 : f32
      %178 = vector.broadcast %cst_109 : f32 to vector<4x8x128xf32>
      %c0_110 = arith.constant 0 : index
      %c0_111 = arith.constant 0 : index
      %c0_112 = arith.constant 0 : index
      %179 = vector.load %arg5[%c0_110, %c0_111, %c0_112] : memref<4x8x128xf32, #tpu.memory_space<vmem>>, vector<4x8x128xf32>
      tpu.vector_store %arg5[%c0_110, %c0_111, %c0_112], %178 {strides = array<i32>} : memref<4x8x128xf32, #tpu.memory_space<vmem>>, vector<4x8x128xf32>,
      %cst_113 = arith.constant 0.000000e+00 : f32
      %180 = vector.broadcast %cst_113 : f32 to vector<4x8x128xf32>
      %c0_114 = arith.constant 0 : index
      %c0_115 = arith.constant 0 : index
      %c0_116 = arith.constant 0 : index
      %181 = vector.load %arg6[%c0_114, %c0_115, %c0_116] : memref<4x8x128xf32, #tpu.memory_space<vmem>>, vector<4x8x128xf32>
      tpu.vector_store %arg6[%c0_114, %c0_115, %c0_116], %180 {strides = array<i32>} : memref<4x8x128xf32, #tpu.memory_space<vmem>>, vector<4x8x128xf32>,
      %cst_117 = arith.constant 0.000000e+00 : f32
      %182 = vector.broadcast %cst_117 : f32 to vector<4x8x128xf32>
      %c0_118 = arith.constant 0 : index
      %c0_119 = arith.constant 0 : index
      %c0_120 = arith.constant 0 : index
      %183 = vector.load %arg7[%c0_118, %c0_119, %c0_120] : memref<4x8x128xf32, #tpu.memory_space<vmem>>, vector<4x8x128xf32>
      tpu.vector_store %arg7[%c0_118, %c0_119, %c0_120], %182 {strides = array<i32>} : memref<4x8x128xf32, #tpu.memory_space<vmem>>, vector<4x8x128xf32>,
    } else {
    }
    %c0_i32_1 = arith.constant 0 : i32
    %c1_i32 = arith.constant 1 : i32
    %3 = arith.muli %c0_i32_1, %c1_i32 : i32
    %c0_i32_2 = arith.constant 0 : i32
    %4 = arith.addi %c0_i32_2, %3 : i32
    %c64_i32 = arith.constant 64 : i32
    %5 = arith.muli %4, %c64_i32 : i32
    %6 = tpu.assume_multiple %5, 64 : i32
    %c0 = arith.constant 0 : index
    %c0_3 = arith.constant 0 : index
    %7 = arith.index_cast %6 : i32 to index
    %c0_4 = arith.constant 0 : index
    %8 = vector.load %arg2[%c0, %c0_3, %7, %c0_4] : memref<1x4x64x128xf32, #tpu.memory_space<vmem>>, vector<1x1x64x128xf32>
    %9 = vector.shape_cast %8 : vector<1x1x64x128xf32> to vector<64x128xf32>
    %c0_i32_5 = arith.constant 0 : i32
    %10 = vector.broadcast %c0_i32_5 : i32 to vector<64x128xi32>
    %c0_6 = arith.constant 0 : index
    %c1 = arith.constant 1 : index
    %11 = arith.index_cast %6 : i32 to index
    %c0_7 = arith.constant 0 : index
    %12 = vector.load %arg2[%c0_6, %c1, %11, %c0_7] : memref<1x4x64x128xf32, #tpu.memory_space<vmem>>, vector<1x1x64x128xf32>
    %13 = vector.shape_cast %12 : vector<1x1x64x128xf32> to vector<64x128xf32>
    %14 = arith.cmpf ogt, %13, %9 : vector<64x128xf32>
    %15 = arith.select %14, %13, %9 : vector<64x128xi1>, vector<64x128xf32>
    %c1_i32_8 = arith.constant 1 : i32
    %16 = vector.broadcast %c1_i32_8 : i32 to vector<64x128xi32>
    %17 = arith.select %14, %16, %10 : vector<64x128xi1>, vector<64x128xi32>
    %c0_9 = arith.constant 0 : index
    %c2 = arith.constant 2 : index
    %18 = arith.index_cast %6 : i32 to index
    %c0_10 = arith.constant 0 : index
    %19 = vector.load %arg2[%c0_9, %c2, %18, %c0_10] : memref<1x4x64x128xf32, #tpu.memory_space<vmem>>, vector<1x1x64x128xf32>
    %20 = vector.shape_cast %19 : vector<1x1x64x128xf32> to vector<64x128xf32>
    %21 = arith.cmpf ogt, %20, %15 : vector<64x128xf32>
    %22 = arith.select %21, %20, %15 : vector<64x128xi1>, vector<64x128xf32>
    %c2_i32 = arith.constant 2 : i32
    %23 = vector.broadcast %c2_i32 : i32 to vector<64x128xi32>
    %24 = arith.select %21, %23, %17 : vector<64x128xi1>, vector<64x128xi32>
    %c0_11 = arith.constant 0 : index
    %c3 = arith.constant 3 : index
    %25 = arith.index_cast %6 : i32 to index
    %c0_12 = arith.constant 0 : index
    %26 = vector.load %arg2[%c0_11, %c3, %25, %c0_12] : memref<1x4x64x128xf32, #tpu.memory_space<vmem>>, vector<1x1x64x128xf32>
    %27 = vector.shape_cast %26 : vector<1x1x64x128xf32> to vector<64x128xf32>
    %28 = arith.cmpf ogt, %27, %22 : vector<64x128xf32>
    %c3_i32 = arith.constant 3 : i32
    %29 = vector.broadcast %c3_i32 : i32 to vector<64x128xi32>
    %30 = arith.select %28, %29, %24 : vector<64x128xi1>, vector<64x128xi32>
    %c0_13 = arith.constant 0 : index
    %31 = arith.index_cast %6 : i32 to index
    %c0_14 = arith.constant 0 : index
    %32 = vector.load %arg3[%c0_13, %31, %c0_14] : memref<1x64x128xi8, #tpu.memory_space<vmem>>, vector<1x64x128xi8>
    %33 = vector.shape_cast %32 : vector<1x64x128xi8> to vector<64x128xi8>
    %34 = arith.extsi %33 : vector<64x128xi8> to vector<64x128xi32>
    %c0_i32_15 = arith.constant 0 : i32
    %35 = vector.broadcast %c0_i32_15 : i32 to vector<64x128xi32>
    %36 = arith.cmpi eq, %34, %35 : vector<64x128xi32>
    %c0_i32_16 = arith.constant 0 : i32
    %37 = vector.broadcast %c0_i32_16 : i32 to vector<64x128xi32>
    %38 = arith.cmpi eq, %30, %37 : vector<64x128xi32>
    %39 = arith.andi %36, %38 : vector<64x128xi1>
    %c0_17 = arith.constant 0 : index
    %c0_18 = arith.constant 0 : index
    %c0_19 = arith.constant 0 : index
    %40 = vector.load %arg5[%c0_17, %c0_18, %c0_19] : memref<4x8x128xf32, #tpu.memory_space<vmem>>, vector<1x8x128xf32>
    %41 = vector.shape_cast %40 : vector<1x8x128xf32> to vector<8x128xf32>
    %42 = arith.extui %39 : vector<64x128xi1> to vector<64x128xi32>
    %43 = arith.sitofp %42 : vector<64x128xi32> to vector<64x128xf32>
    %44 = vector.shape_cast %43 : vector<64x128xf32> to vector<8x8x128xf32>
    %cst = arith.constant dense<0.000000e+00> : vector<8x128xf32>
    %45 = vector.multi_reduction <add>, %44, %cst [0] : vector<8x8x128xf32> to vector<8x128xf32>
    %46 = arith.addf %41, %45 : vector<8x128xf32>
    %c0_20 = arith.constant 0 : index
    %c0_21 = arith.constant 0 : index
    %c0_22 = arith.constant 0 : index
    %47 = vector.load %arg5[%c0_20, %c0_21, %c0_22] : memref<4x8x128xf32, #tpu.memory_space<vmem>>, vector<1x8x128xf32>
    %48 = vector.shape_cast %47 : vector<1x8x128xf32> to vector<8x128xf32>
    %49 = vector.shape_cast %46 : vector<8x128xf32> to vector<1x8x128xf32>
    tpu.vector_store %arg5[%c0_20, %c0_21, %c0_22], %49 {strides = array<i32>} : memref<4x8x128xf32, #tpu.memory_space<vmem>>, vector<1x8x128xf32>,
    %c0_23 = arith.constant 0 : index
    %c0_24 = arith.constant 0 : index
    %c0_25 = arith.constant 0 : index
    %50 = vector.load %arg6[%c0_23, %c0_24, %c0_25] : memref<4x8x128xf32, #tpu.memory_space<vmem>>, vector<1x8x128xf32>
    %51 = vector.shape_cast %50 : vector<1x8x128xf32> to vector<8x128xf32>
    %52 = arith.extui %38 : vector<64x128xi1> to vector<64x128xi32>
    %53 = arith.sitofp %52 : vector<64x128xi32> to vector<64x128xf32>
    %54 = vector.shape_cast %53 : vector<64x128xf32> to vector<8x8x128xf32>
    %cst_26 = arith.constant dense<0.000000e+00> : vector<8x128xf32>
    %55 = vector.multi_reduction <add>, %54, %cst_26 [0] : vector<8x8x128xf32> to vector<8x128xf32>
    %56 = arith.addf %51, %55 : vector<8x128xf32>
    %c0_27 = arith.constant 0 : index
    %c0_28 = arith.constant 0 : index
    %c0_29 = arith.constant 0 : index
    %57 = vector.load %arg6[%c0_27, %c0_28, %c0_29] : memref<4x8x128xf32, #tpu.memory_space<vmem>>, vector<1x8x128xf32>
    %58 = vector.shape_cast %57 : vector<1x8x128xf32> to vector<8x128xf32>
    %59 = vector.shape_cast %56 : vector<8x128xf32> to vector<1x8x128xf32>
    tpu.vector_store %arg6[%c0_27, %c0_28, %c0_29], %59 {strides = array<i32>} : memref<4x8x128xf32, #tpu.memory_space<vmem>>, vector<1x8x128xf32>,
    %c0_30 = arith.constant 0 : index
    %c0_31 = arith.constant 0 : index
    %c0_32 = arith.constant 0 : index
    %60 = vector.load %arg7[%c0_30, %c0_31, %c0_32] : memref<4x8x128xf32, #tpu.memory_space<vmem>>, vector<1x8x128xf32>
    %61 = vector.shape_cast %60 : vector<1x8x128xf32> to vector<8x128xf32>
    %62 = arith.extui %36 : vector<64x128xi1> to vector<64x128xi32>
    %63 = arith.sitofp %62 : vector<64x128xi32> to vector<64x128xf32>
    %64 = vector.shape_cast %63 : vector<64x128xf32> to vector<8x8x128xf32>
    %cst_33 = arith.constant dense<0.000000e+00> : vector<8x128xf32>
    %65 = vector.multi_reduction <add>, %64, %cst_33 [0] : vector<8x8x128xf32> to vector<8x128xf32>
    %66 = arith.addf %61, %65 : vector<8x128xf32>
    %c0_34 = arith.constant 0 : index
    %c0_35 = arith.constant 0 : index
    %c0_36 = arith.constant 0 : index
    %67 = vector.load %arg7[%c0_34, %c0_35, %c0_36] : memref<4x8x128xf32, #tpu.memory_space<vmem>>, vector<1x8x128xf32>
    %68 = vector.shape_cast %67 : vector<1x8x128xf32> to vector<8x128xf32>
    %69 = vector.shape_cast %66 : vector<8x128xf32> to vector<1x8x128xf32>
    tpu.vector_store %arg7[%c0_34, %c0_35, %c0_36], %69 {strides = array<i32>} : memref<4x8x128xf32, #tpu.memory_space<vmem>>, vector<1x8x128xf32>,
    %c1_i32_37 = arith.constant 1 : i32
    %70 = vector.broadcast %c1_i32_37 : i32 to vector<64x128xi32>
    %71 = arith.cmpi eq, %34, %70 : vector<64x128xi32>
    %c1_i32_38 = arith.constant 1 : i32
    %72 = vector.broadcast %c1_i32_38 : i32 to vector<64x128xi32>
    %73 = arith.cmpi eq, %30, %72 : vector<64x128xi32>
    %74 = arith.andi %71, %73 : vector<64x128xi1>
    %c1_39 = arith.constant 1 : index
    %c0_40 = arith.constant 0 : index
    %c0_41 = arith.constant 0 : index
    %75 = vector.load %arg5[%c1_39, %c0_40, %c0_41] : memref<4x8x128xf32, #tpu.memory_space<vmem>>, vector<1x8x128xf32>
    %76 = vector.shape_cast %75 : vector<1x8x128xf32> to vector<8x128xf32>
    %77 = arith.extui %74 : vector<64x128xi1> to vector<64x128xi32>
    %78 = arith.sitofp %77 : vector<64x128xi32> to vector<64x128xf32>
    %79 = vector.shape_cast %78 : vector<64x128xf32> to vector<8x8x128xf32>
    %cst_42 = arith.constant dense<0.000000e+00> : vector<8x128xf32>
    %80 = vector.multi_reduction <add>, %79, %cst_42 [0] : vector<8x8x128xf32> to vector<8x128xf32>
    %81 = arith.addf %76, %80 : vector<8x128xf32>
    %c1_43 = arith.constant 1 : index
    %c0_44 = arith.constant 0 : index
    %c0_45 = arith.constant 0 : index
    %82 = vector.load %arg5[%c1_43, %c0_44, %c0_45] : memref<4x8x128xf32, #tpu.memory_space<vmem>>, vector<1x8x128xf32>
    %83 = vector.shape_cast %82 : vector<1x8x128xf32> to vector<8x128xf32>
    %84 = vector.shape_cast %81 : vector<8x128xf32> to vector<1x8x128xf32>
    tpu.vector_store %arg5[%c1_43, %c0_44, %c0_45], %84 {strides = array<i32>} : memref<4x8x128xf32, #tpu.memory_space<vmem>>, vector<1x8x128xf32>,
    %c1_46 = arith.constant 1 : index
    %c0_47 = arith.constant 0 : index
    %c0_48 = arith.constant 0 : index
    %85 = vector.load %arg6[%c1_46, %c0_47, %c0_48] : memref<4x8x128xf32, #tpu.memory_space<vmem>>, vector<1x8x128xf32>
    %86 = vector.shape_cast %85 : vector<1x8x128xf32> to vector<8x128xf32>
    %87 = arith.extui %73 : vector<64x128xi1> to vector<64x128xi32>
    %88 = arith.sitofp %87 : vector<64x128xi32> to vector<64x128xf32>
    %89 = vector.shape_cast %88 : vector<64x128xf32> to vector<8x8x128xf32>
    %cst_49 = arith.constant dense<0.000000e+00> : vector<8x128xf32>
    %90 = vector.multi_reduction <add>, %89, %cst_49 [0] : vector<8x8x128xf32> to vector<8x128xf32>
    %91 = arith.addf %86, %90 : vector<8x128xf32>
    %c1_50 = arith.constant 1 : index
    %c0_51 = arith.constant 0 : index
    %c0_52 = arith.constant 0 : index
    %92 = vector.load %arg6[%c1_50, %c0_51, %c0_52] : memref<4x8x128xf32, #tpu.memory_space<vmem>>, vector<1x8x128xf32>
    %93 = vector.shape_cast %92 : vector<1x8x128xf32> to vector<8x128xf32>
    %94 = vector.shape_cast %91 : vector<8x128xf32> to vector<1x8x128xf32>
    tpu.vector_store %arg6[%c1_50, %c0_51, %c0_52], %94 {strides = array<i32>} : memref<4x8x128xf32, #tpu.memory_space<vmem>>, vector<1x8x128xf32>,
    %c1_53 = arith.constant 1 : index
    %c0_54 = arith.constant 0 : index
    %c0_55 = arith.constant 0 : index
    %95 = vector.load %arg7[%c1_53, %c0_54, %c0_55] : memref<4x8x128xf32, #tpu.memory_space<vmem>>, vector<1x8x128xf32>
    %96 = vector.shape_cast %95 : vector<1x8x128xf32> to vector<8x128xf32>
    %97 = arith.extui %71 : vector<64x128xi1> to vector<64x128xi32>
    %98 = arith.sitofp %97 : vector<64x128xi32> to vector<64x128xf32>
    %99 = vector.shape_cast %98 : vector<64x128xf32> to vector<8x8x128xf32>
    %cst_56 = arith.constant dense<0.000000e+00> : vector<8x128xf32>
    %100 = vector.multi_reduction <add>, %99, %cst_56 [0] : vector<8x8x128xf32> to vector<8x128xf32>
    %101 = arith.addf %96, %100 : vector<8x128xf32>
    %c1_57 = arith.constant 1 : index
    %c0_58 = arith.constant 0 : index
    %c0_59 = arith.constant 0 : index
    %102 = vector.load %arg7[%c1_57, %c0_58, %c0_59] : memref<4x8x128xf32, #tpu.memory_space<vmem>>, vector<1x8x128xf32>
    %103 = vector.shape_cast %102 : vector<1x8x128xf32> to vector<8x128xf32>
    %104 = vector.shape_cast %101 : vector<8x128xf32> to vector<1x8x128xf32>
    tpu.vector_store %arg7[%c1_57, %c0_58, %c0_59], %104 {strides = array<i32>} : memref<4x8x128xf32, #tpu.memory_space<vmem>>, vector<1x8x128xf32>,
    %c2_i32_60 = arith.constant 2 : i32
    %105 = vector.broadcast %c2_i32_60 : i32 to vector<64x128xi32>
    %106 = arith.cmpi eq, %34, %105 : vector<64x128xi32>
    %c2_i32_61 = arith.constant 2 : i32
    %107 = vector.broadcast %c2_i32_61 : i32 to vector<64x128xi32>
    %108 = arith.cmpi eq, %30, %107 : vector<64x128xi32>
    %109 = arith.andi %106, %108 : vector<64x128xi1>
    %c2_62 = arith.constant 2 : index
    %c0_63 = arith.constant 0 : index
    %c0_64 = arith.constant 0 : index
    %110 = vector.load %arg5[%c2_62, %c0_63, %c0_64] : memref<4x8x128xf32, #tpu.memory_space<vmem>>, vector<1x8x128xf32>
    %111 = vector.shape_cast %110 : vector<1x8x128xf32> to vector<8x128xf32>
    %112 = arith.extui %109 : vector<64x128xi1> to vector<64x128xi32>
    %113 = arith.sitofp %112 : vector<64x128xi32> to vector<64x128xf32>
    %114 = vector.shape_cast %113 : vector<64x128xf32> to vector<8x8x128xf32>
    %cst_65 = arith.constant dense<0.000000e+00> : vector<8x128xf32>
    %115 = vector.multi_reduction <add>, %114, %cst_65 [0] : vector<8x8x128xf32> to vector<8x128xf32>
    %116 = arith.addf %111, %115 : vector<8x128xf32>
    %c2_66 = arith.constant 2 : index
    %c0_67 = arith.constant 0 : index
    %c0_68 = arith.constant 0 : index
    %117 = vector.load %arg5[%c2_66, %c0_67, %c0_68] : memref<4x8x128xf32, #tpu.memory_space<vmem>>, vector<1x8x128xf32>
    %118 = vector.shape_cast %117 : vector<1x8x128xf32> to vector<8x128xf32>
    %119 = vector.shape_cast %116 : vector<8x128xf32> to vector<1x8x128xf32>
    tpu.vector_store %arg5[%c2_66, %c0_67, %c0_68], %119 {strides = array<i32>} : memref<4x8x128xf32, #tpu.memory_space<vmem>>, vector<1x8x128xf32>,
    %c2_69 = arith.constant 2 : index
    %c0_70 = arith.constant 0 : index
    %c0_71 = arith.constant 0 : index
    %120 = vector.load %arg6[%c2_69, %c0_70, %c0_71] : memref<4x8x128xf32, #tpu.memory_space<vmem>>, vector<1x8x128xf32>
    %121 = vector.shape_cast %120 : vector<1x8x128xf32> to vector<8x128xf32>
    %122 = arith.extui %108 : vector<64x128xi1> to vector<64x128xi32>
    %123 = arith.sitofp %122 : vector<64x128xi32> to vector<64x128xf32>
    %124 = vector.shape_cast %123 : vector<64x128xf32> to vector<8x8x128xf32>
    %cst_72 = arith.constant dense<0.000000e+00> : vector<8x128xf32>
    %125 = vector.multi_reduction <add>, %124, %cst_72 [0] : vector<8x8x128xf32> to vector<8x128xf32>
    %126 = arith.addf %121, %125 : vector<8x128xf32>
    %c2_73 = arith.constant 2 : index
    %c0_74 = arith.constant 0 : index
    %c0_75 = arith.constant 0 : index
    %127 = vector.load %arg6[%c2_73, %c0_74, %c0_75] : memref<4x8x128xf32, #tpu.memory_space<vmem>>, vector<1x8x128xf32>
    %128 = vector.shape_cast %127 : vector<1x8x128xf32> to vector<8x128xf32>
    %129 = vector.shape_cast %126 : vector<8x128xf32> to vector<1x8x128xf32>
    tpu.vector_store %arg6[%c2_73, %c0_74, %c0_75], %129 {strides = array<i32>} : memref<4x8x128xf32, #tpu.memory_space<vmem>>, vector<1x8x128xf32>,
    %c2_76 = arith.constant 2 : index
    %c0_77 = arith.constant 0 : index
    %c0_78 = arith.constant 0 : index
    %130 = vector.load %arg7[%c2_76, %c0_77, %c0_78] : memref<4x8x128xf32, #tpu.memory_space<vmem>>, vector<1x8x128xf32>
    %131 = vector.shape_cast %130 : vector<1x8x128xf32> to vector<8x128xf32>
    %132 = arith.extui %106 : vector<64x128xi1> to vector<64x128xi32>
    %133 = arith.sitofp %132 : vector<64x128xi32> to vector<64x128xf32>
    %134 = vector.shape_cast %133 : vector<64x128xf32> to vector<8x8x128xf32>
    %cst_79 = arith.constant dense<0.000000e+00> : vector<8x128xf32>
    %135 = vector.multi_reduction <add>, %134, %cst_79 [0] : vector<8x8x128xf32> to vector<8x128xf32>
    %136 = arith.addf %131, %135 : vector<8x128xf32>
    %c2_80 = arith.constant 2 : index
    %c0_81 = arith.constant 0 : index
    %c0_82 = arith.constant 0 : index
    %137 = vector.load %arg7[%c2_80, %c0_81, %c0_82] : memref<4x8x128xf32, #tpu.memory_space<vmem>>, vector<1x8x128xf32>
    %138 = vector.shape_cast %137 : vector<1x8x128xf32> to vector<8x128xf32>
    %139 = vector.shape_cast %136 : vector<8x128xf32> to vector<1x8x128xf32>
    tpu.vector_store %arg7[%c2_80, %c0_81, %c0_82], %139 {strides = array<i32>} : memref<4x8x128xf32, #tpu.memory_space<vmem>>, vector<1x8x128xf32>,
    %c3_i32_83 = arith.constant 3 : i32
    %140 = vector.broadcast %c3_i32_83 : i32 to vector<64x128xi32>
    %141 = arith.cmpi eq, %34, %140 : vector<64x128xi32>
    %c3_i32_84 = arith.constant 3 : i32
    %142 = vector.broadcast %c3_i32_84 : i32 to vector<64x128xi32>
    %143 = arith.cmpi eq, %30, %142 : vector<64x128xi32>
    %144 = arith.andi %141, %143 : vector<64x128xi1>
    %c3_85 = arith.constant 3 : index
    %c0_86 = arith.constant 0 : index
    %c0_87 = arith.constant 0 : index
    %145 = vector.load %arg5[%c3_85, %c0_86, %c0_87] : memref<4x8x128xf32, #tpu.memory_space<vmem>>, vector<1x8x128xf32>
    %146 = vector.shape_cast %145 : vector<1x8x128xf32> to vector<8x128xf32>
    %147 = arith.extui %144 : vector<64x128xi1> to vector<64x128xi32>
    %148 = arith.sitofp %147 : vector<64x128xi32> to vector<64x128xf32>
    %149 = vector.shape_cast %148 : vector<64x128xf32> to vector<8x8x128xf32>
    %cst_88 = arith.constant dense<0.000000e+00> : vector<8x128xf32>
    %150 = vector.multi_reduction <add>, %149, %cst_88 [0] : vector<8x8x128xf32> to vector<8x128xf32>
    %151 = arith.addf %146, %150 : vector<8x128xf32>
    %c3_89 = arith.constant 3 : index
    %c0_90 = arith.constant 0 : index
    %c0_91 = arith.constant 0 : index
    %152 = vector.load %arg5[%c3_89, %c0_90, %c0_91] : memref<4x8x128xf32, #tpu.memory_space<vmem>>, vector<1x8x128xf32>
    %153 = vector.shape_cast %152 : vector<1x8x128xf32> to vector<8x128xf32>
    %154 = vector.shape_cast %151 : vector<8x128xf32> to vector<1x8x128xf32>
    tpu.vector_store %arg5[%c3_89, %c0_90, %c0_91], %154 {strides = array<i32>} : memref<4x8x128xf32, #tpu.memory_space<vmem>>, vector<1x8x128xf32>,
    %c3_92 = arith.constant 3 : index
    %c0_93 = arith.constant 0 : index
    %c0_94 = arith.constant 0 : index
    %155 = vector.load %arg6[%c3_92, %c0_93, %c0_94] : memref<4x8x128xf32, #tpu.memory_space<vmem>>, vector<1x8x128xf32>
    %156 = vector.shape_cast %155 : vector<1x8x128xf32> to vector<8x128xf32>
    %157 = arith.extui %143 : vector<64x128xi1> to vector<64x128xi32>
    %158 = arith.sitofp %157 : vector<64x128xi32> to vector<64x128xf32>
    %159 = vector.shape_cast %158 : vector<64x128xf32> to vector<8x8x128xf32>
    %cst_95 = arith.constant dense<0.000000e+00> : vector<8x128xf32>
    %160 = vector.multi_reduction <add>, %159, %cst_95 [0] : vector<8x8x128xf32> to vector<8x128xf32>
    %161 = arith.addf %156, %160 : vector<8x128xf32>
    %c3_96 = arith.constant 3 : index
    %c0_97 = arith.constant 0 : index
    %c0_98 = arith.constant 0 : index
    %162 = vector.load %arg6[%c3_96, %c0_97, %c0_98] : memref<4x8x128xf32, #tpu.memory_space<vmem>>, vector<1x8x128xf32>
    %163 = vector.shape_cast %162 : vector<1x8x128xf32> to vector<8x128xf32>
    %164 = vector.shape_cast %161 : vector<8x128xf32> to vector<1x8x128xf32>
    tpu.vector_store %arg6[%c3_96, %c0_97, %c0_98], %164 {strides = array<i32>} : memref<4x8x128xf32, #tpu.memory_space<vmem>>, vector<1x8x128xf32>,
    %c3_99 = arith.constant 3 : index
    %c0_100 = arith.constant 0 : index
    %c0_101 = arith.constant 0 : index
    %165 = vector.load %arg7[%c3_99, %c0_100, %c0_101] : memref<4x8x128xf32, #tpu.memory_space<vmem>>, vector<1x8x128xf32>
    %166 = vector.shape_cast %165 : vector<1x8x128xf32> to vector<8x128xf32>
    %167 = arith.extui %141 : vector<64x128xi1> to vector<64x128xi32>
    %168 = arith.sitofp %167 : vector<64x128xi32> to vector<64x128xf32>
    %169 = vector.shape_cast %168 : vector<64x128xf32> to vector<8x8x128xf32>
    %cst_102 = arith.constant dense<0.000000e+00> : vector<8x128xf32>
    %170 = vector.multi_reduction <add>, %169, %cst_102 [0] : vector<8x8x128xf32> to vector<8x128xf32>
    %171 = arith.addf %166, %170 : vector<8x128xf32>
    %c3_103 = arith.constant 3 : index
    %c0_104 = arith.constant 0 : index
    %c0_105 = arith.constant 0 : index
    %172 = vector.load %arg7[%c3_103, %c0_104, %c0_105] : memref<4x8x128xf32, #tpu.memory_space<vmem>>, vector<1x8x128xf32>
    %173 = vector.shape_cast %172 : vector<1x8x128xf32> to vector<8x128xf32>
    %174 = vector.shape_cast %171 : vector<8x128xf32> to vector<1x8x128xf32>
    tpu.vector_store %arg7[%c3_103, %c0_104, %c0_105], %174 {strides = array<i32>} : memref<4x8x128xf32, #tpu.memory_space<vmem>>, vector<1x8x128xf32>,
    %c1_i32_106 = arith.constant 1 : i32
    %c0_i32_107 = arith.constant 0 : i32
    %175 = arith.cmpi eq, %arg1, %c0_i32_107 : i32
    %176 = arith.extui %175 : i1 to i32
    %c0_i32_108 = arith.constant 0 : i32
    %177 = arith.cmpi ne, %176, %c0_i32_108 : i32
    scf.if %177 {
      %c0_109 = arith.constant 0 : index
      %c0_110 = arith.constant 0 : index
      %c0_111 = arith.constant 0 : index
      %178 = vector.load %arg5[%c0_109, %c0_110, %c0_111] : memref<4x8x128xf32, #tpu.memory_space<vmem>>, vector<4x8x128xf32>
      %cst_112 = arith.constant dense<0.000000e+00> : vector<4x128xf32>
      %179 = vector.multi_reduction <add>, %178, %cst_112 [1] : vector<4x8x128xf32> to vector<4x128xf32>
      %cst_113 = arith.constant dense<0.000000e+00> : vector<4xf32>
      %180 = vector.multi_reduction <add>, %179, %cst_113 [1] : vector<4x128xf32> to vector<4xf32>
      %181 = vector.shape_cast %180 : vector<4xf32> to vector<4x1xf32>
      %c0_114 = arith.constant 0 : index
      %c0_115 = arith.constant 0 : index
      %c0_116 = arith.constant 0 : index
      %182 = vector.load %arg6[%c0_114, %c0_115, %c0_116] : memref<4x8x128xf32, #tpu.memory_space<vmem>>, vector<4x8x128xf32>
      %cst_117 = arith.constant dense<0.000000e+00> : vector<4x128xf32>
      %183 = vector.multi_reduction <add>, %182, %cst_117 [1] : vector<4x8x128xf32> to vector<4x128xf32>
      %cst_118 = arith.constant dense<0.000000e+00> : vector<4xf32>
      %184 = vector.multi_reduction <add>, %183, %cst_118 [1] : vector<4x128xf32> to vector<4xf32>
      %185 = vector.shape_cast %184 : vector<4xf32> to vector<4x1xf32>
      %c0_119 = arith.constant 0 : index
      %c0_120 = arith.constant 0 : index
      %c0_121 = arith.constant 0 : index
      %186 = vector.load %arg7[%c0_119, %c0_120, %c0_121] : memref<4x8x128xf32, #tpu.memory_space<vmem>>, vector<4x8x128xf32>
      %cst_122 = arith.constant dense<0.000000e+00> : vector<4x128xf32>
      %187 = vector.multi_reduction <add>, %186, %cst_122 [1] : vector<4x8x128xf32> to vector<4x128xf32>
      %cst_123 = arith.constant dense<0.000000e+00> : vector<4xf32>
      %188 = vector.multi_reduction <add>, %187, %cst_123 [1] : vector<4x128xf32> to vector<4xf32>
      %189 = vector.shape_cast %188 : vector<4xf32> to vector<4x1xf32>
      %cst_124 = arith.constant 2.000000e+00 : f32
      %190 = vector.broadcast %cst_124 : f32 to vector<4x1xf32>
      %191 = arith.mulf %190, %181 : vector<4x1xf32>
      %192 = arith.addf %185, %189 : vector<4x1xf32>
      %cst_125 = arith.constant 9.99999974E-6 : f32
      %193 = vector.broadcast %cst_125 : f32 to vector<4x1xf32>
      %194 = arith.addf %192, %193 : vector<4x1xf32>
      %195 = arith.divf %191, %194 : vector<4x1xf32>
      %196 = tpu.iota {dimensions = array<i32: 0>} : vector<4x1xi32>
      %c1_i32_126 = arith.constant 1 : i32
      %197 = vector.broadcast %c1_i32_126 : i32 to vector<4x1xi32>
      %198 = arith.cmpi sge, %196, %197 : vector<4x1xi32>
      %cst_127 = arith.constant 0.000000e+00 : f32
      %199 = vector.broadcast %cst_127 : f32 to vector<4x1xf32>
      %200 = arith.select %198, %195, %199 : vector<4x1xi1>, vector<4x1xf32>
      %cst_128 = arith.constant dense<0.000000e+00> : vector<1xf32>
      %201 = vector.multi_reduction <add>, %200, %cst_128 [0] : vector<4x1xf32> to vector<1xf32>
      %202 = vector.shape_cast %201 : vector<1xf32> to vector<1x1xf32>
      %cst_129 = arith.constant 0.333333343 : f32
      %203 = vector.broadcast %cst_129 : f32 to vector<1x1xf32>
      %204 = arith.mulf %202, %203 : vector<1x1xf32>
      %c0_130 = arith.constant 0 : index
      %c0_131 = arith.constant 0 : index
      %c0_132 = arith.constant 0 : index
      %205 = vector.load %arg4[%c0_130, %c0_131, %c0_132] : memref<1x1x1xf32, #tpu.memory_space<vmem>>, vector<1x1x1xf32>
      %206 = vector.shape_cast %205 : vector<1x1x1xf32> to vector<1x1xf32>
      %207 = vector.shape_cast %204 : vector<1x1xf32> to vector<1x1x1xf32>
      tpu.vector_store %arg4[%c0_130, %c0_131, %c0_132], %207 {strides = array<i32>} : memref<1x1x1xf32, #tpu.memory_space<vmem>>, vector<1x1x1xf32>,
    } else {
    }
    return
  }
  func.func @transform_0(%arg0: i32, %arg1: i32) -> (i32, i32, i32, i32) {
    %c0_i32 = arith.constant 0 : i32
    %c0_i32_0 = arith.constant 0 : i32
    %c0_i32_1 = arith.constant 0 : i32
    return %arg0, %c0_i32, %arg1, %c0_i32_0 : i32, i32, i32, i32
  }
  func.func @transform_1(%arg0: i32, %arg1: i32) -> (i32, i32, i32) {
    %c0_i32 = arith.constant 0 : i32
    %c0_i32_0 = arith.constant 0 : i32
    return %arg0, %arg1, %c0_i32 : i32, i32, i32
  }
  func.func @transform_2(%arg0: i32, %arg1: i32) -> (i32, i32, i32) {
    %c0_i32 = arith.constant 0 : i32
    %c0_i32_0 = arith.constant 0 : i32
    %c0_i32_1 = arith.constant 0 : i32
    return %arg0, %c0_i32, %c0_i32_0 : i32, i32, i32
  }
}

</mosaic_0001>

<bundles_post_ra>
// kernel: tpu_custom_call.1
= control target key start
LH: loop header
LB: loop body
LE: loop exit
PB: predicated region body
PF: predicated region fallthrough
CT: control target
= control target key end

     0   :  { %7 = vsyncpa [#allocation6], 0  ;;  %s2150_s0 = inlined_call_operand.hbm [shape: f32[2,4,64,128], index: 0, kind: input, shape index: {}]   ;;  %s2151_s1 = inlined_call_operand.hbm [shape: s8[2,64,128], index: 1, kind: input, shape index: {}]   ;;  %s2152_s2 = inlined_call_operand.vmem [shape: f32[2,1,1], index: 2, kind: output, shape index: {}]  }
   0x1   :  { %9 = vsyncpa [#allocation6 + $0x1], 0 }
   0x2   :  { %10 = vsyncpa [#allocation8], 0 }
   0x3   :  { %12 = vsyncpa [#allocation8 + $0x1], 0  ;;  %s1345_s9 = smov 0   ;;  %s1347_s10 = smov 0  }
   0x4   :  { %s1349_s11 = smov 0   ;;  %s1351_s12 = smov 0  }
   0x5   :  { %s1353_s13 = smov 0   ;;  %s1355_s14 = smov 0  }
   0x6 LB: > { %s1009_s15 = sadd.s32 4294967295, %s1322_s14   ;;  %s30_s16 = sadd.s32 1, %s1318_s13  ;;  %s1322_s14 = sphi %s1355_s14, %s18_s14   ;;  %s1318_s13 = sphi %s1353_s13, %s2336_s13   ;;  %s1314_s12 = sphi %s1351_s12, %s2335_s12   ;;  %s1310_s11 = sphi %s1349_s11, %s2334_s11   ;;  %s1306_s10 = sphi %s1347_s10, %s2333_s10   ;;  %s1302_s9 = sphi %s1345_s9, %s2332_s9  }
   0x7   : > { %p32_p0 = scmp.ge.s32.totalorder %s30_s16, 2  ;;  %s39_s17 = sadd.s32 1, %s1310_s11 }
   0x8   : > { %p46_p1 = scmp.ne.s32.totalorder %s1310_s11, %s1306_s10  ;;  %p47_p2 = scmp.eq.s32.totalorder %s1322_s14, 0 }
   0x9   : > { %s2338_s16 = smov (%p32_p0, %s30_s16), 0  ;;  %p52_p4 = scmp.ne.s32.totalorder %s1306_s10, %s1302_s9 }
   0xa   : > { %p1381_p3 = por %p47_p2, %p46_p1  ;;  %s34_s19 = ssub.s32 %s1318_s13, %s2338_s16 }
   0xb   : > { %p53_p5 = scmp.eq.s32.totalorder %s1009_s15, 0  ;;  %p37_p6 = scmp.eq.s32.totalorder %s34_s19, 0 }
   0xc   : > { %p1157_p8 = scmp.lt.s32.totalorder %s1322_s14, 2  ;;  %s1397_s22 = sand.u32 1, %s1310_s11  }
   0xd   : > { %p1388_p7 = por %p53_p5, %p52_p4  ;;  %s1144_s23 = sshll.u32 %s1318_s13, 12 }
   0xe   : > { %s1394_s21 = scalar_select %p37_p6, %s1310_s11, %s39_s17  }
   0xf   : > { %s1013_s24 = sshll.u32 %s1397_s22, 8  ;;  %s142_s27 = scalar_lea.hbm %s2150_s0, %s1144_s23 }
  0x10   : > { %s134_s28 = scalar_lea.vmem [#allocation5], %s1013_s24  ;;  %p1406_p9 = pnand %p1157_p8, %p1381_p3 }
  0x11   : > { %s143_s29 = sshll.u32 %s134_s28, 4  ;;  %s131_s3 = scalar_lea.sflag [#allocation6], %s1397_s22  ;;  %s144_s29 = int_to_ptr.vmem [resolvable:$true] %s143_s29 }
  0x12   : > { %p1214_p10 = pneg %p1406_p9  ;;  %s1225_s4 = scalar_lea.vmem %s144_s29, 4096 }
  0x13   : > { %p1226_p11 = scmp.ne.s32.totalorder %s144_s29, %s1225_s4  ;;  %s1324_s5 = smov [#allocation5]  }
  0x14   : > { %s1230_s6 = sshll.u32 %s1324_s5, 4  ;;  %s1231_s6 = int_to_ptr.vmem [resolvable:$false] %s1230_s6 }
  0x15   : > { %p1228_p12 = pnand %p1226_p11, %p1214_p10  ;;  %s1232_s7 = scalar_lea.vmem %s1231_s6, 8192 }
  0x16   : > { %p1233_p0 = scmp.lt.s32.totalorder %s144_s29, %s1231_s6  ;;  %p1234_p1 = scmp.lt.s32.totalorder %s1232_s7, %s1225_s4 }
  0x17   : > { %p1229_p13 = pneg %p1228_p12 }
  0x18   : > { %p1235_p2 = por %p1234_p1, %p1233_p0 }
  0x1a   : > { %p1236_p3 = pnand %p1235_p2, %p1229_p13 }
  0x1c   : > { %1239 = shalt.err (!%p1236_p3)
}
  0x1d   : > { %s1325_s8 = smov 128   ;;  %s1326_s9 = smov 8  }
  0x1e   : > { %1153 = dma.hbm_to_vmem [thread:$0]  (!%p1406_p9), %s142_s27, 4096, %s144_s29, %s131_s3, %s1325_s8, %s1325_s8, %s1326_s9  }
  0x1f   : > { %p1019_p4 = scmp.ge.s32.totalorder %s1322_s14, 1  ;;  %p174_p5 = scmp.lt.s32.totalorder %s1322_s14, 3 }
  0x20   : > { %s1016_s15 = sshll.u32 %s1397_s22, 4  ;;  %s1145_s18 = sshll.u32 %s1318_s13, 8 }
  0x21   : > { %p1424_p6 = pnand %p1019_p4, %p174_p5  ;;  %s157_s19 = scalar_lea.vmem [#allocation7], %s1016_s15 }
  0x22   : > { %s166_s23 = sshll.u32 %s157_s19, 4  ;;  %s165_s26 = scalar_lea.hbm %s2151_s1, %s1145_s18  ;;  %s167_s23 = int_to_ptr.vmem [resolvable:$true] %s166_s23 }
  0x23   : > { %s154_s28 = scalar_lea.sflag [#allocation8], %s1397_s22  ;;  %s1253_s4 = scalar_lea.vmem %s167_s23, 256 }
  0x24   : > { %p1254_p8 = scmp.ne.s32.totalorder %s167_s23, %s1253_s4  ;;  %s1327_s27 = smov [#allocation7]  }
  0x25   : > { %s1258_s29 = sshll.u32 %s1327_s27, 4  ;;  %s1259_s29 = int_to_ptr.vmem [resolvable:$false] %s1258_s29 }
  0x26   : > { %p1256_p11 = pnand %p1254_p8, %p1214_p10  ;;  %s1260_s3 = scalar_lea.vmem %s1259_s29, 512 }
  0x27   : > { %p1261_p13 = scmp.lt.s32.totalorder %s167_s23, %s1259_s29  ;;  %p1262_p0 = scmp.lt.s32.totalorder %s1260_s3, %s1253_s4 }
  0x28   : > { %p1257_p12 = pneg %p1256_p11 }
  0x29   : > { %p1263_p1 = por %p1262_p0, %p1261_p13 }
  0x2b   : > { %p1264_p2 = pnand %p1263_p1, %p1257_p12 }
  0x2d   : > { %1267 = shalt.err (!%p1264_p2)
}
  0x2e   : > { %1156 = dma.hbm_to_vmem [thread:$0]  (!%p1406_p9), %s165_s26, 256, %s167_s23, %s154_s28, %s1325_s8, %s1325_s8, %s1326_s9  }
  0x2f   : > { %178 = sbr.rel (%p1424_p6) target bundleno = 349 (0x15d), region = 28  ;;  %s180_s22 = sand.u32 (!%p1424_p6), 1, %s1306_s10  }
  0x30   : > { %s1020_s5 = sshll.u32 (!%p1424_p6), %s180_s22, 8  ;;  %s181_s6 = scalar_lea.sflag (!%p1424_p6), [#allocation6], %s180_s22 }
  0x31   : > { %s1444_s7 = scalar_lea.vmem (!%p1424_p6), [#allocation5], %s1020_s5 }
  0x34   : > { %1293 = dma.done.wait (%p1388_p7), %s181_s6, 4096  }
  0x35   : > { %1295 = vsyncadd (%p1388_p7), %s181_s6, 4294963200  ;;  %s1021_s30 = sshll.u32 %s180_s22, 4  ;;  %s190_s15 = scalar_lea.sflag [#allocation8], %s180_s22 }
  0x36   : > { %s1450_s18 = scalar_lea.vmem [#allocation7], %s1021_s30 }
  0x37   : > { %1297 = dma.done.wait (%p1388_p7), %s190_s15, 256  }
  0x38   : > { %1299 = vsyncadd (%p1388_p7), %s190_s15, 4294967040  ;;  %v238_v0 = vld [vmem:[%s1444_s7] sm:$0xff]  ;;  %v239_v1 = vld [vmem:[%s1444_s7 + $0x8] sm:$0xff]  ;;  %v1328_v29 = vmov 0   ;;  %p219_p7 = scmp.lt.s32.totalorder %s1314_s12, 1 }
  0x39   : > { %v240_v2 = vld [vmem:[%s1444_s7 + $0x10] sm:$0xff]  ;;  %v241_v3 = vld [vmem:[%s1444_s7 + $0x18] sm:$0xff]  ;;  %v242_v4 = vld [vmem:[%s1444_s7 + $0x20] sm:$0xff] }
  0x3a   : > { %v243_v5 = vld [vmem:[%s1444_s7 + $0x28] sm:$0xff]  ;;  %v244_v6 = vld [vmem:[%s1444_s7 + $0x30] sm:$0xff]  ;;  %v245_v7 = vld [vmem:[%s1444_s7 + $0x38] sm:$0xff]  ;;  %s2340_s12 = smov (!%p219_p7, %s1314_s12), 1 }
  0x3b   : > { %v1022_v8 = vld [vmem:[%s1444_s7 + $0x40] sm:$0xff]  ;;  %v1023_v9 = vld [vmem:[%s1444_s7 + $0x48] sm:$0xff]  ;;  %v1024_v10 = vld [vmem:[%s1444_s7 + $0x50] sm:$0xff]  ;;  %s221_s9 = scalar_lea.vmem %s2152_s2, %s2340_s12 }
  0x3c   : > { %v1025_v11 = vld [vmem:[%s1444_s7 + $0x58] sm:$0xff]  ;;  %vm256_vm0 = vcmp.gt.f32.partialorder %v1022_v8, %v238_v0  ;;  %v1026_v12 = vld [vmem:[%s1444_s7 + $0x60] sm:$0xff]  ;;  %v1027_v13 = vld [vmem:[%s1444_s7 + $0x68] sm:$0xff]  ;;  %vm257_vm1 = vcmp.gt.f32.partialorder %v1023_v9, %v239_v1  ;;  %vm258_vm2 = vcmp.gt.f32.partialorder %v1024_v10, %v240_v2 }
  0x3d   : > { %v1028_v14 = vld [vmem:[%s1444_s7 + $0x70] sm:$0xff]  ;;  %vm259_vm3 = vcmp.gt.f32.partialorder %v1025_v11, %v241_v3  ;;  %v1029_v15 = vld [vmem:[%s1444_s7 + $0x78] sm:$0xff]  ;;  %vm260_vm4 = vcmp.gt.f32.partialorder %v1026_v12, %v242_v4  ;;  %vm261_vm5 = vcmp.gt.f32.partialorder %v1027_v13, %v243_v5  ;;  %v264_v16 = vsel %vm256_vm0, %v1022_v8, %v238_v0  ;;  %v1030_v19 = vld [vmem:[%s1444_s7 + $0x80] sm:$0xff] }
  0x3e   : > { %vm262_vm6 = vcmp.gt.f32.partialorder %v1028_v14, %v244_v6  ;;  %vm263_vm7 = vcmp.gt.f32.partialorder %v1029_v15, %v245_v7  ;;  %v265_v17 = vsel %vm257_vm1, %v1023_v9, %v239_v1  ;;  %v266_v18 = vsel %vm258_vm2, %v1024_v10, %v240_v2  ;;  %v1031_v20 = vld [vmem:[%s1444_s7 + $0x88] sm:$0xff]  ;;  %v1032_v25 = vld [vmem:[%s1444_s7 + $0x90] sm:$0xff]  ;;  %v1033_v26 = vld [vmem:[%s1444_s7 + $0x98] sm:$0xff] }
  0x3f   : > { %v267_v21 = vsel %vm259_vm3, %v1025_v11, %v241_v3  ;;  %v268_v22 = vsel %vm260_vm4, %v1026_v12, %v242_v4  ;;  %v269_v23 = vsel %vm261_vm5, %v1027_v13, %v243_v5  ;;  %v270_v24 = vsel %vm262_vm6, %v1028_v14, %v244_v6  ;;  %v1034_v27 = vld [vmem:[%s1444_s7 + $0xa0] sm:$0xff]  ;;  %v1035_v33 = vld [vmem:[%s1444_s7 + $0xa8] sm:$0xff]  ;;  %v1036_v34 = vld [vmem:[%s1444_s7 + $0xb0] sm:$0xff] }
  0x40   : > { %v271_v28 = vsel %vm263_vm7, %v1029_v15, %v245_v7  ;;  %v272_v30 = vsel %vm256_vm0, 1, %v1328_v29  ;;  %v273_v31 = vsel %vm257_vm1, 1, %v1328_v29  ;;  %v274_v32 = vsel %vm258_vm2, 1, %v1328_v29  ;;  %v1037_v35 = vld [vmem:[%s1444_s7 + $0xb8] sm:$0xff]  ;;  %v1038_v44 = vld [vmem:[%s1444_s7 + $0xc0] sm:$0xff]  ;;  %v1039_v45 = vld [vmem:[%s1444_s7 + $0xc8] sm:$0xff] }
  0x41   : > { %v275_v36 = vsel %vm259_vm3, 1, %v1328_v29  ;;  %v276_v37 = vsel %vm260_vm4, 1, %v1328_v29  ;;  %v277_v38 = vsel %vm261_vm5, 1, %v1328_v29  ;;  %vm290_vm8 = vcmp.gt.f32.partialorder %v1030_v19, %v264_v16  ;;  %v1040_v50 = vld [vmem:[%s1444_s7 + $0xd0] sm:$0xff]  ;;  %v1041_v51 = vld [vmem:[%s1444_s7 + $0xd8] sm:$0xff]  ;;  %v1042_v52 = vld [vmem:[%s1444_s7 + $0xe0] sm:$0xff] }
  0x42   : > { %vm291_vm9 = vcmp.gt.f32.partialorder %v1031_v20, %v265_v17  ;;  %vm292_vm10 = vcmp.gt.f32.partialorder %v1032_v25, %v266_v18  ;;  %vm293_vm11 = vcmp.gt.f32.partialorder %v1033_v26, %v267_v21  ;;  %vm294_vm12 = vcmp.gt.f32.partialorder %v1034_v27, %v268_v22  ;;  %v1043_v57 = vld [vmem:[%s1444_s7 + $0xe8] sm:$0xff]  ;;  %v1044_v58 = vld [vmem:[%s1444_s7 + $0xf0] sm:$0xff]  ;;  %v1045_v62 = vld [vmem:[%s1444_s7 + $0xf8] sm:$0xff] }
  0x43   : > { %v278_v39 = vsel %vm262_vm6, 1, %v1328_v29  ;;  %vm295_vm13 = vcmp.gt.f32.partialorder %v1035_v33, %v269_v23  ;;  %vm296_vm14 = vcmp.gt.f32.partialorder %v1036_v34, %v270_v24  ;;  %vm297_vm15 = vcmp.gt.f32.partialorder %v1037_v35, %v271_v28 }
  0x44   : > { %v279_v40 = vsel %vm263_vm7, 1, %v1328_v29  ;;  %v298_v41 = vsel %vm290_vm8, %v1030_v19, %v264_v16  ;;  %v299_v42 = vsel %vm291_vm9, %v1031_v20, %v265_v17  ;;  %v300_v43 = vsel %vm292_vm10, %v1032_v25, %v266_v18 }
  0x45   : > { %v301_v46 = vsel %vm293_vm11, %v1033_v26, %v267_v21  ;;  %v302_v47 = vsel %vm294_vm12, %v1034_v27, %v268_v22  ;;  %v303_v48 = vsel %vm295_vm13, %v1035_v33, %v269_v23  ;;  %v304_v49 = vsel %vm296_vm14, %v1036_v34, %v270_v24 }
  0x46   : > { %v305_v53 = vsel %vm297_vm15, %v1037_v35, %v271_v28  ;;  %v306_v54 = vsel %vm290_vm8, 2, %v272_v30  ;;  %v307_v55 = vsel %vm291_vm9, 2, %v273_v31  ;;  %v308_v56 = vsel %vm292_vm10, 2, %v274_v32 }
  0x47   : > { %v309_v59 = vsel %vm293_vm11, 2, %v275_v36  ;;  %v310_v60 = vsel %vm294_vm12, 2, %v276_v37  ;;  %v311_v61 = vsel %vm295_vm13, 2, %v277_v38  ;;  %vm324_vm0 = vcmp.gt.f32.partialorder %v1038_v44, %v298_v41 }
  0x48   : > { %vm325_vm1 = vcmp.gt.f32.partialorder %v1039_v45, %v299_v42  ;;  %vm326_vm2 = vcmp.gt.f32.partialorder %v1040_v50, %v300_v43  ;;  %vm327_vm3 = vcmp.gt.f32.partialorder %v1041_v51, %v301_v46  ;;  %vm328_vm4 = vcmp.gt.f32.partialorder %v1042_v52, %v302_v47  ;;  %v340_v51 = vld [vmem:[%s1450_s18] sm:$0xff] }
  0x49   : > { %v312_v63 = vsel %vm296_vm14, 2, %v278_v39  ;;  %vm329_vm5 = vcmp.gt.f32.partialorder %v1043_v57, %v303_v48  ;;  %vm330_vm6 = vcmp.gt.f32.partialorder %v1044_v58, %v304_v49  ;;  %v1519_v0 = vsel %vm324_vm0, 3, %v306_v54 }
  0x4a   : > { %v1521_v1 = vsel %vm325_vm1, 3, %v307_v55  ;;  %v1523_v2 = vsel %vm326_vm2, 3, %v308_v56  ;;  %v1525_v3 = vsel %vm327_vm3, 3, %v309_v59  ;;  %v313_v4 = vsel %vm297_vm15, 2, %v279_v40 }
  0x4b   : > { %vm331_vm7 = vcmp.gt.f32.partialorder %v1045_v62, %v305_v53  ;;  %v1528_v5 = vsel %vm328_vm4, 3, %v310_v60  ;;  %vm358_vm8 = vcmp.eq.s32.totalorder %v1519_v0, 0  ;;  %v1531_v6 = vsel %vm329_vm5, 3, %v311_v61 }
  0x4c   : > { %v1533_v7 = vsel %vm330_vm6, 3, %v312_v63  ;;  %vm359_vm9 = vcmp.eq.s32.totalorder %v1521_v1, 0  ;;  %vm360_vm10 = vcmp.eq.s32.totalorder %v1523_v2, 0  ;;  %vm2181_vm11 = vcmp.eq.s32.totalorder %v1525_v3, 0 }
  0x4d   : > { %v1329_v8 = vmov 0.0   ;;  %v1541_v10 = vsel %vm331_vm7, 3, %v313_v4  ;;  %vm2180_vm12 = vcmp.eq.s32.totalorder %v1528_v5, 0  ;;  %vm2179_vm13 = vcmp.eq.s32.totalorder %v1531_v6, 0 }
  0x4e   : > { %v1054_v9 = vsel %vm358_vm8, 1.0, %v1329_v8  ;;  %v1055_v11 = vsel %vm359_vm9, 1.0, %v1329_v8  ;;  %v1056_v12 = vsel %vm360_vm10, 1.0, %v1329_v8  ;;  %vm2178_vm14 = vcmp.eq.s32.totalorder %v1533_v7, 0 }
  0x4f   : > { %v417_v13 = vadd.f32 %v1055_v11, %v1054_v9  ;;  %v1057_v14 = vsel %vm2181_vm11, 1.0, %v1329_v8  ;;  %vm2154_vm15 = vcmp.eq.s32.totalorder %v1519_v0, 1  ;;  %vm2153_vm0 = vcmp.eq.s32.totalorder %v1521_v1, 1  ;;  %v341_v9 = vld [vmem:[%s1450_s18 + $0x8] sm:$0xff] }
  0x50   : > { %vm2155_vm1 = vcmp.eq.s32.totalorder %v1523_v2, 1  ;;  %vm2163_vm2 = vcmp.eq.s32.totalorder %v1541_v10, 0  ;;  %v1058_v15 = vsel %vm2180_vm12, 1.0, %v1329_v8  ;;  %v1059_v17 = vsel %vm2179_vm13, 1.0, %v1329_v8 }
  0x51   : > { %v418_v16 = vadd.f32 %v1056_v12, %v417_v13  ;;  %vm2162_vm3 = vcmp.eq.s32.totalorder %v1525_v3, 1  ;;  %v1078_v18 = vsel %vm2154_vm15, 1.0, %v1329_v8  ;;  %v1079_v19 = vsel %vm2153_vm0, 1.0, %v1329_v8 }
  0x52   : > { %v1060_v20 = vsel %vm2178_vm14, 1.0, %v1329_v8  ;;  %vm2156_vm4 = vcmp.eq.s32.totalorder %v1528_v5, 1  ;;  %v1080_v22 = vsel %vm2155_vm1, 1.0, %v1329_v8  ;;  %vm2157_vm5 = vcmp.eq.s32.totalorder %v1531_v6, 1 }
  0x53   : > { %v419_v21 = vadd.f32 %v1057_v14, %v418_v16  ;;  %vm2160_vm6 = vcmp.eq.s32.totalorder %v1533_v7, 1  ;;  %v521_v23 = vadd.f32 %v1079_v19, %v1078_v18  ;;  %vm2158_vm7 = vcmp.eq.s32.totalorder %v1519_v0, 2 }
  0x54   : > { %vm2161_vm0 = vcmp.eq.s32.totalorder %v1541_v10, 1  ;;  %v1081_v25 = vsel %vm2162_vm3, 1.0, %v1329_v8  ;;  %vm2159_vm15 = vcmp.eq.s32.totalorder %v1521_v1, 2  ;;  %v1061_v26 = vsel %vm2163_vm2, 1.0, %v1329_v8 }
  0x55   : > { %v420_v24 = vadd.f32 %v1058_v15, %v419_v21  ;;  %v1082_v27 = vsel %vm2156_vm4, 1.0, %v1329_v8  ;;  %v522_v28 = vadd.f32 %v1080_v22, %v521_v23  ;;  %vm2164_vm1 = vcmp.eq.s32.totalorder %v1523_v2, 2 }
  0x56   : > { %v1083_v30 = vsel %vm2157_vm5, 1.0, %v1329_v8  ;;  %v1102_v31 = vsel %vm2158_vm7, 1.0, %v1329_v8  ;;  %v1103_v32 = vsel %vm2159_vm15, 1.0, %v1329_v8  ;;  %v1084_v33 = vsel %vm2160_vm6, 1.0, %v1329_v8 }
  0x57   : > { %v421_v29 = vadd.f32 %v1059_v17, %v420_v24  ;;  %v1085_v34 = vsel %vm2161_vm0, 1.0, %v1329_v8  ;;  %v523_v35 = vadd.f32 %v1081_v25, %v522_v28  ;;  %vm2165_vm4 = vcmp.eq.s32.totalorder %v1525_v3, 2 }
  0x58   : > { %vm2177_vm5 = vcmp.eq.s32.totalorder %v1528_v5, 2  ;;  %vm2166_vm7 = vcmp.eq.s32.totalorder %v1531_v6, 2  ;;  %v1104_v37 = vsel %vm2164_vm1, 1.0, %v1329_v8  ;;  %v626_v39 = vadd.f32 %v1103_v32, %v1102_v31 }
  0x59   : > { %v422_v36 = vadd.f32 %v1060_v20, %v421_v29  ;;  %v524_v38 = vadd.f32 %v1082_v27, %v523_v35  ;;  %vm2167_vm15 = vcmp.eq.s32.totalorder %v1519_v0, 3  ;;  %vm2176_vm6 = vcmp.eq.s32.totalorder %v1521_v1, 3 }
  0x5a   : > { %vm2173_vm0 = vcmp.eq.s32.totalorder %v1533_v7, 2  ;;  %vm2169_vm3 = vcmp.eq.s32.totalorder %v1541_v10, 2  ;;  %v1105_v40 = vsel %vm2165_vm4, 1.0, %v1329_v8  ;;  %vm2175_vm2 = vcmp.eq.s32.totalorder %v1523_v2, 3 }
  0x5b   : > { %v423_v41 = vadd.f32 %v1061_v26, %v422_v36  ;;  %v525_v42 = vadd.f32 %v1083_v30, %v524_v38  ;;  %v1106_v43 = vsel %vm2177_vm5, 1.0, %v1329_v8  ;;  %v627_v44 = vadd.f32 %v1104_v37, %v626_v39 }
  0x5c   : > { %v1107_v45 = vsel %vm2166_vm7, 1.0, %v1329_v8  ;;  %vm2168_vm1 = vcmp.eq.s32.totalorder %v1525_v3, 3  ;;  %v1126_v46 = vsel %vm2167_vm15, 1.0, %v1329_v8  ;;  %v1127_v47 = vsel %vm2176_vm6, 1.0, %v1329_v8 }
  0x5d   : > { %v526_v48 = vadd.f32 %v1084_v33, %v525_v42  ;;  %v628_v49 = vadd.f32 %v1105_v40, %v627_v44  ;;  %vm2170_vm4 = vcmp.eq.s32.totalorder %v1528_v5, 3  ;;  %v1128_v50 = vsel %vm2175_vm2, 1.0, %v1329_v8 }
  0x5e   : > { %v1108_v52 = vsel %vm2173_vm0, 1.0, %v1329_v8  ;;  %vm2171_vm7 = vcmp.eq.s32.totalorder %v1531_v6, 3  ;;  %vm2172_vm15 = vcmp.eq.s32.totalorder %v1533_v7, 3  ;;  %v731_v53 = vadd.f32 %v1127_v47, %v1126_v46 }
  0x5f   : > { %v527_v54 = vadd.f32 %v1085_v34, %v526_v48  ;;  %v629_v55 = vadd.f32 %v1106_v43, %v628_v49  ;;  %v1129_v56 = vsel %vm2168_vm1, 1.0, %v1329_v8  ;;  %v817_v57 = vrot.slane %v423_v41, 4 }
  0x60   : > { %v1109_v58 = vsel %vm2169_vm3, 1.0, %v1329_v8  ;;  %v1130_v59 = vsel %vm2170_vm4, 1.0, %v1329_v8  ;;  %v732_v60 = vadd.f32 %v1128_v50, %v731_v53  ;;  %v1655_v61 = vunpack.c.0.s8 %v340_v51 }
  0x61   : > { %v630_v62 = vadd.f32 %v1107_v45, %v629_v55  ;;  %v818_v63 = vadd.f32 %v817_v57, %v423_v41  ;;  %v823_v4 = vrot.slane %v527_v54, 4  ;;  %v1658_v11 = vunpack.c.1.s8 %v340_v51 }
  0x62   : > { %vm2174_vm1 = vcmp.eq.s32.totalorder %v1541_v10, 3  ;;  %v1131_v12 = vsel %vm2171_vm7, 1.0, %v1329_v8  ;;  %v1132_v13 = vsel %vm2172_vm15, 1.0, %v1329_v8  ;;  %v733_v14 = vadd.f32 %v1129_v56, %v732_v60 }
  0x63   : > { %v631_v15 = vadd.f32 %v1108_v52, %v630_v62  ;;  %v819_v16 = vrot.slane %v818_v63, 2  ;;  %v824_v17 = vadd.f32 %v823_v4, %v527_v54  ;;  %v1667_v18 = vunpack.c.2.s8 %v340_v51 }
  0x64   : > { %v734_v19 = vadd.f32 %v1130_v59, %v733_v14  ;;  %v1669_v20 = vunpack.c.3.s8 %v340_v51  ;;  %v1671_v21 = vunpack.c.0.s8 %v341_v9  ;;  %vm350_vm3 = vcmp.eq.s32.totalorder %v1655_v61, 0 }
  0x65   : > { %v632_v22 = vadd.f32 %v1109_v58, %v631_v15  ;;  %vm2188_vm4 = vcmask 1041409   ;;  %v820_v23 = vadd.f32 %v819_v16, %v818_v63  ;;  %v825_v24 = vrot.slane %v824_v17, 2 }
  0x66   : > { %vm351_vm7 = vcmp.eq.s32.totalorder %v1658_v11, 0  ;;  %v1133_v25 = vsel %vm2174_vm1, 1.0, %v1329_v8  ;;  %v735_v26 = vadd.f32 %v1131_v12, %v734_v19  ;;  %v1678_v27 = vunpack.c.1.s8 %v341_v9 }
  0x67   : > { %v1680_v28 = vunpack.c.2.s8 %v341_v9  ;;  %v821_v29 = vrot.slane %v820_v23, 1  ;;  %v826_v30 = vadd.f32 %v825_v24, %v824_v17  ;;  %v829_v31 = vrot.slane %v632_v22, 4 }
  0x68   : > { %vm2182_vm15 = vcmp.eq.s32.totalorder %v1667_v18, 0  ;;  %v736_v32 = vadd.f32 %v1132_v13, %v735_v26  ;;  %vm2183_vm0 = vcmp.eq.s32.totalorder %v1669_v20, 0  ;;  %v1062_v33 = vsel %vm350_vm3, 1.0, %v1329_v8 }
  0x69   : > { %v1063_v34 = vsel %vm351_vm7, 1.0, %v1329_v8  ;;  %v827_v35 = vrot.slane %v826_v30, 1  ;;  %v830_v36 = vadd.f32 %v829_v31, %v632_v22  ;;  %v1690_v37 = vunpack.c.3.s8 %v341_v9 }
  0x6a   : > { %vm2190_vm1 = vcmp.eq.s32.totalorder %v1671_v21, 0  ;;  %v737_v38 = vadd.f32 %v1133_v25, %v736_v32  ;;  %vm2192_vm2 = vcmask 1042434   ;;  %vm2185_vm6 = vcmp.eq.s32.totalorder %v1678_v27, 0 }
  0x6b   : > { %vm2184_vm5 = vcmp.eq.s32.totalorder %v1680_v28, 0  ;;  %v1064_v39 = vsel %vm2182_vm15, 1.0, %v1329_v8  ;;  %v822_v40 = vadd.f32 %v821_v29, %v820_v23  ;;  %v831_v41 = vrot.slane %v830_v36, 2 }
  0x6c   : > { %v1065_v42 = vsel %vm2183_vm0, 1.0, %v1329_v8  ;;  %v443_v43 = vadd.f32 %v1063_v34, %v1062_v33  ;;  %v828_v44 = vadd.f32 %v827_v35, %v826_v30  ;;  %v835_v45 = vrot.slane %v737_v38, 4 }
  0x6d   : > { %vm2187_vm14 = vcmp.eq.s32.totalorder %v1655_v61, 1  ;;  %vm2186_vm13 = vcmp.eq.s32.totalorder %v1658_v11, 1  ;;  %vm2197_vm12 = vcmask 1043459   ;;  %v832_v46 = vadd.f32 %v831_v41, %v830_v36 }
  0x6e   : > { %vm2189_vm11 = vcmp.eq.s32.totalorder %v1690_v37, 0  ;;  %v1066_v47 = vsel %vm2190_vm1, 1.0, %v1329_v8  ;;  %v444_v48 = vadd.f32 %v1064_v39, %v443_v43  ;;  %vm2199_vm15 = vcmask 1043456  }
  0x6f   : > { %v836_v49 = vadd.f32 %v835_v45, %v737_v38  ;;  %v1067_v50 = vsel %vm2185_vm6, 1.0, %v1329_v8  ;;  %v1068_v51 = vsel %vm2184_vm5, 1.0, %v1329_v8  ;;  %vm454_vm0 = vcmp.eq.s32.totalorder %v1667_v18, 1 }
  0x70   : > { %v833_v52 = vrot.slane %v832_v46, 1  ;;  %v445_v53 = vadd.f32 %v1065_v42, %v444_v48  ;;  %v1086_v54 = vsel %vm2187_vm14, 1.0, %v1329_v8  ;;  %v1087_v55 = vsel %vm2186_vm13, 1.0, %v1329_v8 }
  0x71   : > { %v837_v56 = vrot.slane %v836_v49, 2  ;;  %v845_v57 = vsel %vm2188_vm4, %v828_v44, %v822_v40  ;;  %v1069_v58 = vsel %vm2189_vm11, 1.0, %v1329_v8  ;;  %vm2191_vm5 = vcmp.eq.s32.totalorder %v1669_v20, 1 }
  0x72   : > { %v834_v59 = vadd.f32 %v833_v52, %v832_v46  ;;  %v446_v60 = vadd.f32 %v1066_v47, %v445_v53  ;;  %vm2202_vm6 = vcmp.eq.s32.totalorder %v1671_v21, 1  ;;  %v1088_v62 = vsel %vm454_vm0, 1.0, %v1329_v8 }
  0x73   : > { %v838_v63 = vadd.f32 %v837_v56, %v836_v49  ;;  %vm2194_vm13 = vcmp.eq.s32.totalorder %v1678_v27, 1  ;;  %vm2193_vm14 = vcmp.eq.s32.totalorder %v1680_v28, 1  ;;  %v548_v4 = vadd.f32 %v1087_v55, %v1086_v54 }
  0x74   : > { %v447_v9 = vadd.f32 %v1067_v50, %v446_v60  ;;  %v1089_v12 = vsel %vm2191_vm5, 1.0, %v1329_v8  ;;  %vm2196_vm4 = vcmp.eq.s32.totalorder %v1655_v61, 2  ;;  %vm2195_vm11 = vcmp.eq.s32.totalorder %v1658_v11, 2 }
  0x75   : > { %v839_v13 = vrot.slane %v838_v63, 1  ;;  %vm2200_vm1 = vcmp.eq.s32.totalorder %v1690_v37, 1  ;;  %v1090_v14 = vsel %vm2202_vm6, 1.0, %v1329_v8  ;;  %v549_v15 = vadd.f32 %v1088_v62, %v548_v4 }
  0x76   : > { %v846_v16 = vsel %vm2192_vm2, %v834_v59, %v845_v57  ;;  %v1091_v17 = vsel %vm2194_vm13, 1.0, %v1329_v8  ;;  %v1092_v19 = vsel %vm2193_vm14, 1.0, %v1329_v8  ;;  %vm2198_vm5 = vcmp.eq.s32.totalorder %v1667_v18, 2 }
  0x77   : > { %v840_v22 = vadd.f32 %v839_v13, %v838_v63  ;;  %v550_v23 = vadd.f32 %v1089_v12, %v549_v15  ;;  %v1110_v24 = vsel %vm2196_vm4, 1.0, %v1329_v8  ;;  %v1111_v25 = vsel %vm2195_vm11, 1.0, %v1329_v8  ;;  %vm1768_vm11 = vmand %vm350_vm3, %vm358_vm8 }
  0x78   : > { %v448_v26 = vadd.f32 %v1068_v51, %v447_v9  ;;  %v1093_v29 = vsel %vm2200_vm1, 1.0, %v1329_v8  ;;  %vm2201_vm2 = vcmp.eq.s32.totalorder %v1669_v20, 2  ;;  %vm2208_vm14 = vcmp.eq.s32.totalorder %v1671_v21, 2 }
  0x79   : > { %v847_v30 = vsel %vm2197_vm12, %v840_v22, %v846_v16  ;;  %v551_v31 = vadd.f32 %v1090_v14, %v550_v23  ;;  %vm2203_vm13 = vcmp.eq.s32.totalorder %v1678_v27, 2  ;;  %v1112_v32 = vsel %vm2198_vm5, 1.0, %v1329_v8  ;;  %vm1779_vm5 = vmand %vm351_vm7, %vm359_vm9 }
  0x7a   : > { %v849_v34 = vsel %vm2199_vm15, %v847_v30, 0.0  ;;  %vm2207_vm4 = vcmp.eq.s32.totalorder %v1680_v28, 2  ;;  %v653_v35 = vadd.f32 %v1111_v25, %v1110_v24  ;;  %vm2205_vm12 = vcmp.eq.s32.totalorder %v1655_v61, 3 }
  0x7b   : > { %850 = vadd.xlane.f32.xlu0 %v849_v34  ;;  %v552_v38 = vadd.f32 %v1091_v17, %v551_v31  ;;  %vm2206_vm8 = vcmp.eq.s32.totalorder %v1690_v37, 2  ;;  %v1113_v39 = vsel %vm2201_vm2, 1.0, %v1329_v8  ;;  %vm2204_vm3 = vcmp.eq.s32.totalorder %v1658_v11, 3 }
  0x7c   : > { %vm2219_vm15 = vcmp.eq.s32.totalorder %v1667_v18, 0  ;;  %v449_v41 = vadd.f32 %v1069_v58, %v448_v26  ;;  %v1114_v42 = vsel %vm2208_vm14, 1.0, %v1329_v8  ;;  %v654_v43 = vadd.f32 %v1112_v32, %v653_v35 }
  0x7d   : > { %vm1792_vm1 = vmand %vm2219_vm15, %vm360_vm10  ;;  %vm2210_vm9 = vcmp.eq.s32.totalorder %v1667_v18, 3  ;;  %vm2222_vm7 = vcmp.eq.s32.totalorder %v1525_v3, 0  ;;  %vm2223_vm2 = vcmp.eq.s32.totalorder %v1669_v20, 0  ;;  %v553_v45 = vadd.f32 %v1092_v19, %v552_v38 }
  0x7e   : > { %vm1804_vm6 = vmand %vm2223_vm2, %vm2222_vm7  ;;  %v1115_v46 = vsel %vm2203_vm13, 1.0, %v1329_v8  ;;  %v1134_v47 = vsel %vm2205_vm12, 1.0, %v1329_v8  ;;  %v1135_v48 = vsel %vm2204_vm3, 1.0, %v1329_v8  ;;  %vm2226_vm10 = vcmp.eq.s32.totalorder %v1528_v5, 0 }
  0x7f   : > { %vm2227_vm15 = vcmp.eq.s32.totalorder %v1671_v21, 0  ;;  %v1116_v50 = vsel %vm2207_vm4, 1.0, %v1329_v8  ;;  %v1117_v51 = vsel %vm2206_vm8, 1.0, %v1329_v8  ;;  %v655_v52 = vadd.f32 %v1113_v39, %v654_v43 }
  0x80   : > { %vm1821_vm2 = vmand %vm2227_vm15, %vm2226_vm10  ;;  %vm2209_vm7 = vcmp.eq.s32.totalorder %v1669_v20, 3  ;;  %vm2230_vm13 = vcmp.eq.s32.totalorder %v1531_v6, 0  ;;  %vm2231_vm3 = vcmp.eq.s32.totalorder %v1678_v27, 0  ;;  %v554_v54 = vadd.f32 %v1093_v29, %v553_v45 }
  0x81   : > { %vm1836_vm12 = vmand %vm2231_vm3, %vm2230_vm13  ;;  %v1136_v55 = vsel %vm2210_vm9, 1.0, %v1329_v8  ;;  %vm2234_vm8 = vcmp.eq.s32.totalorder %v1533_v7, 0  ;;  %vm2235_vm4 = vcmp.eq.s32.totalorder %v1680_v28, 0  ;;  %v656_v57 = vadd.f32 %v1114_v42, %v655_v52 }
  0x82   : > { %vm1849_vm14 = vmand %vm2235_vm4, %vm2234_vm8  ;;  %vm668_vm13 = vcmp.eq.s32.totalorder %v1680_v28, 3  ;;  %v758_v58 = vadd.f32 %v1135_v48, %v1134_v47  ;;  %v856_v59 = vrot.slane %v449_v41, 4  ;;  %vm2238_vm3 = vcmp.eq.s32.totalorder %v1519_v0, 1 }
  0x83   : > { %vm2239_vm15 = vcmp.eq.s32.totalorder %v1655_v61, 1  ;;  %v1137_v62 = vsel %vm2209_vm7, 1.0, %v1329_v8  ;;  %v862_v63 = vrot.slane %v554_v54, 4  ;;  %v1046_v4 = vsel %vm1768_vm11, 1.0, %v1329_v8 }
  0x84   : > { %vm1858_vm10 = vmand %vm2239_vm15, %vm2238_vm3  ;;  %v1047_v9 = vsel %vm1779_vm5, 1.0, %v1329_v8  ;;  %vm2242_vm4 = vcmp.eq.s32.totalorder %v1521_v1, 1  ;;  %vm2243_vm8 = vcmp.eq.s32.totalorder %v1658_v11, 1  ;;  %v657_v13 = vadd.f32 %v1115_v46, %v656_v57 }
  0x85   : > { %vm1875_vm15 = vmand %vm2243_vm8, %vm2242_vm4  ;;  %v759_v14 = vadd.f32 %v1136_v55, %v758_v58  ;;  %v857_v15 = vadd.f32 %v856_v59, %v449_v41  ;;  %vm2246_vm7 = vcmp.eq.s32.totalorder %v1541_v10, 0  ;;  %vm2247_vm11 = vcmp.eq.s32.totalorder %v1690_v37, 0 }
  0x86   : > { %vm1884_vm9 = vmand %vm2247_vm11, %vm2246_vm7  ;;  %vm2250_vm5 = vcmp.eq.s32.totalorder %v1523_v2, 1  ;;  %vm2253_vm8 = vcmp.eq.s32.totalorder %v1671_v21, 3  ;;  %vm2254_vm3 = vcmp.eq.s32.totalorder %v1678_v27, 3  ;;  %v863_v23 = vadd.f32 %v862_v63, %v554_v54 }
  0x87   : > { %vm1892_vm4 = vmand %vm454_vm0, %vm2250_vm5  ;;  %v1138_v19 = vsel %vm2253_vm8, 1.0, %v1329_v8  ;;  %v1139_v22 = vsel %vm2254_vm3, 1.0, %v1329_v8  ;;  %v1048_v24 = vsel %vm1792_vm1, 1.0, %v1329_v8  ;;  %vm2255_vm7 = vcmp.eq.s32.totalorder %v1525_v3, 1 }
  0x88   : > { %vm2256_vm0 = vcmp.eq.s32.totalorder %v1669_v20, 1  ;;  %v658_v26 = vadd.f32 %v1116_v50, %v657_v13  ;;  %v760_v29 = vadd.f32 %v1137_v62, %v759_v14  ;;  %v858_v30 = vrot.slane %v857_v15, 2 }
  0x89   : > { %vm1909_vm11 = vmand %vm2256_vm0, %vm2255_vm7  ;;  %v391_v31 = vadd.f32 %v1047_v9, %v1046_v4  ;;  %vm2259_vm5 = vcmp.eq.s32.totalorder %v1528_v5, 1  ;;  %vm2260_vm3 = vcmp.eq.s32.totalorder %v1671_v21, 1  ;;  %v1140_v33 = vsel %vm668_vm13, 1.0, %v1329_v8 }
  0x8a   : > { %vm1917_vm8 = vmand %vm2260_vm3, %vm2259_vm5  ;;  %v864_v34 = vrot.slane %v863_v23, 2  ;;  %v1049_v35 = vsel %vm1804_vm6, 1.0, %v1329_v8  ;;  %vm2263_vm1 = vcmp.eq.s32.totalorder %v1531_v6, 1  ;;  %vm2264_vm7 = vcmp.eq.s32.totalorder %v1678_v27, 1 }
  0x8b   : > { %vm1931_vm0 = vmand %vm2264_vm7, %vm2263_vm1  ;;  %v1070_v38 = vsel %vm1858_vm10, 1.0, %v1329_v8  ;;  %v659_v39 = vadd.f32 %v1117_v51, %v658_v26  ;;  %v761_v40 = vadd.f32 %v1138_v19, %v760_v29  ;;  %v392_v41 = vadd.f32 %v1048_v24, %v391_v31 }
  0x8c   : > { %vm2267_vm5 = vcmp.eq.s32.totalorder %v1533_v7, 1  ;;  %vm2268_vm3 = vcmp.eq.s32.totalorder %v1680_v28, 1  ;;  %v1071_v43 = vsel %vm1875_vm15, 1.0, %v1329_v8  ;;  %vm2271_vm1 = vcmp.eq.s32.totalorder %v1690_v37, 3 }
  0x8d   : > { %vm1942_vm6 = vmand %vm2268_vm3, %vm2267_vm5  ;;  %v1141_v44 = vsel %vm2271_vm1, 1.0, %v1329_v8  ;;  %v859_v45 = vadd.f32 %v858_v30, %v857_v15  ;;  %v865_v46 = vadd.f32 %v864_v34, %v863_v23  ;;  %v1050_v47 = vsel %vm1821_vm2, 1.0, %v1329_v8 }
  0x8e   : > { %vm2272_vm10 = vcmp.eq.s32.totalorder %v1541_v10, 1  ;;  %vm2273_vm7 = vcmp.eq.s32.totalorder %v1690_v37, 1  ;;  %v762_v50 = vadd.f32 %v1139_v22, %v761_v40  ;;  %v868_v51 = vrot.slane %v659_v39, 4 }
  0x8f   : > { %vm1959_vm5 = vmand %vm2273_vm7, %vm2272_vm10  ;;  %v393_v52 = vadd.f32 %v1049_v35, %v392_v41  ;;  %v1072_v54 = vsel %vm1892_vm4, 1.0, %v1329_v8  ;;  %vm2276_vm15 = vcmp.eq.s32.totalorder %v1519_v0, 2  ;;  %vm2277_vm3 = vcmp.eq.s32.totalorder %v1655_v61, 2 }
  0x90   : > { %vm1970_vm2 = vmand %vm2277_vm3, %vm2276_vm15  ;;  %v1051_v55 = vsel %vm1836_vm12, 1.0, %v1329_v8  ;;  %v1052_v57 = vsel %vm1849_vm14, 1.0, %v1329_v8  ;;  %v1073_v58 = vsel %vm1909_vm11, 1.0, %v1329_v8  ;;  %v494_v59 = vadd.f32 %v1071_v43, %v1070_v38 }
  0x91   : > { %vm2280_vm4 = vcmp.eq.s32.totalorder %v1521_v1, 2  ;;  %vm2281_vm1 = vcmp.eq.s32.totalorder %v1658_v11, 2  ;;  %v763_v62 = vadd.f32 %v1140_v33, %v762_v50  ;;  %v869_v53 = vadd.f32 %v868_v51, %v659_v39 }
  0x92   : > { %vm1987_vm10 = vmand %vm2281_vm1, %vm2280_vm4  ;;  %v394_v63 = vadd.f32 %v1050_v47, %v393_v52  ;;  %v1074_v56 = vsel %vm1917_vm8, 1.0, %v1329_v8  ;;  %vm2284_vm12 = vcmp.eq.s32.totalorder %v1523_v2, 2  ;;  %vm2285_vm14 = vcmp.eq.s32.totalorder %v1667_v18, 2 }
  0x93   : > { %vm1998_vm11 = vmand %vm2285_vm14, %vm2284_vm12  ;;  %v860_v9 = vrot.slane %v859_v45, 1  ;;  %v866_v12 = vrot.slane %v865_v46, 1  ;;  %v495_v13 = vadd.f32 %v1072_v54, %v494_v59  ;;  %vm2288_vm7 = vcmp.eq.s32.totalorder %v1525_v3, 2 }
  0x94   : > { %vm2289_vm15 = vcmp.eq.s32.totalorder %v1669_v20, 2  ;;  %v1094_v15 = vsel %vm1970_vm2, 1.0, %v1329_v8  ;;  %v764_v17 = vadd.f32 %v1141_v44, %v763_v62  ;;  %v870_v19 = vrot.slane %v869_v53, 2 }
  0x95   : > { %vm2006_vm3 = vmand %vm2289_vm15, %vm2288_vm7  ;;  %v395_v22 = vadd.f32 %v1051_v55, %v394_v63  ;;  %vm2292_vm8 = vcmp.eq.s32.totalorder %v1528_v5, 2  ;;  %vm2293_vm4 = vcmp.eq.s32.totalorder %v1671_v21, 2  ;;  %v1095_v24 = vsel %vm1987_vm10, 1.0, %v1329_v8 }
  0x96   : > { %vm2017_vm1 = vmand %vm2293_vm4, %vm2292_vm8  ;;  %v1053_v25 = vsel %vm1884_vm9, 1.0, %v1329_v8  ;;  %v1075_v26 = vsel %vm1931_vm0, 1.0, %v1329_v8  ;;  %v1076_v29 = vsel %vm1942_vm6, 1.0, %v1329_v8  ;;  %v496_v30 = vadd.f32 %v1073_v58, %v495_v13 }
  0x97   : > { %vm2296_vm2 = vcmp.eq.s32.totalorder %v1519_v0, 3  ;;  %vm2297_vm12 = vcmp.eq.s32.totalorder %v1655_v61, 3  ;;  %v871_v32 = vadd.f32 %v870_v19, %v869_v53  ;;  %v874_v16 = vrot.slane %v764_v17, 4 }
  0x98   : > { %vm2037_vm14 = vmand %vm2297_vm12, %vm2296_vm2  ;;  %v396_v33 = vadd.f32 %v1052_v57, %v395_v22  ;;  %v1096_v34 = vsel %vm1998_vm11, 1.0, %v1329_v8  ;;  %vm2300_vm9 = vcmp.eq.s32.totalorder %v1521_v1, 3  ;;  %vm2301_vm0 = vcmp.eq.s32.totalorder %v1658_v11, 3 }
  0x99   : > { %vm679_vm6 = vmand %vm2301_vm0, %vm2300_vm9  ;;  %v861_v35 = vadd.f32 %v860_v9, %v859_v45  ;;  %v867_v0 = vadd.f32 %v866_v12, %v865_v46  ;;  %v497_v36 = vadd.f32 %v1074_v56, %v496_v30  ;;  %vm2302_vm10 = vcmp.eq.s32.totalorder %v1531_v6, 2 }
  0x9a   : > { %vm2303_vm7 = vcmp.eq.s32.totalorder %v1678_v27, 2  ;;  %v599_v38 = vadd.f32 %v1095_v24, %v1094_v15  ;;  %v872_v39 = vrot.slane %v871_v32, 1  ;;  %v875_v40 = vadd.f32 %v874_v16, %v764_v17 }
  0x9b   : > { %vm2052_vm15 = vmand %vm2303_vm7, %vm2302_vm10  ;;  %v397_v41 = vadd.f32 %v1053_v25, %v396_v33  ;;  %v1097_v1 = vsel %vm2006_vm3, 1.0, %v1329_v8  ;;  %vm2306_vm11 = vcmp.eq.s32.totalorder %v1523_v2, 3  ;;  %vm2307_vm8 = vcmp.eq.s32.totalorder %v1667_v18, 3 }
  0x9c   : > { %vm680_vm4 = vmand %vm2307_vm8, %vm2306_vm11  ;;  %v498_v11 = vadd.f32 %v1075_v26, %v497_v36  ;;  %vm2308_vm2 = vcmp.eq.s32.totalorder %v1533_v7, 2  ;;  %vm2309_vm12 = vcmp.eq.s32.totalorder %v1680_v28, 2  ;;  %v600_v43 = vadd.f32 %v1096_v34, %v599_v38 }
  0x9d   : > { %vm2067_vm9 = vmand %vm2309_vm12, %vm2308_vm2  ;;  %v1118_v44 = vsel %vm2037_vm14, 1.0, %v1329_v8  ;;  %v1119_v45 = vsel %vm679_vm6, 1.0, %v1329_v8  ;;  %v876_v2 = vrot.slane %v875_v40, 2  ;;  %v1077_v18 = vsel %vm1959_vm5, 1.0, %v1329_v8 }
  0x9e   : > { %v1098_v46 = vsel %vm2017_vm1, 1.0, %v1329_v8  ;;  %vm2312_vm3 = vcmp.eq.s32.totalorder %v1525_v3, 3  ;;  %vm2313_vm0 = vcmp.eq.s32.totalorder %v1669_v20, 3  ;;  %v873_v47 = vadd.f32 %v872_v39, %v871_v32 }
  0x9f   : > { %vm681_vm10 = vmand %vm2313_vm0, %vm2312_vm3  ;;  %v499_v50 = vadd.f32 %v1076_v29, %v498_v11  ;;  %v601_v51 = vadd.f32 %v1097_v1, %v600_v43  ;;  %vm2314_vm14 = vcmp.eq.s32.totalorder %v1528_v5, 3  ;;  %vm2315_vm6 = vcmp.eq.s32.totalorder %v1671_v21, 3 }
  0xa0   : > { %vm682_vm7 = vmand %vm2315_vm6, %vm2314_vm14  ;;  %v1120_v48 = vsel %vm680_vm4, 1.0, %v1329_v8  ;;  %v877_v52 = vadd.f32 %v876_v2, %v875_v40  ;;  %vm2316_vm5 = vcmask 1041409   ;;  %v1099_v3 = vsel %vm2052_vm15, 1.0, %v1329_v8 }
  0xa1   : > { %v884_v54 = vsel %vm2316_vm5, %v867_v0, %v861_v35  ;;  %v704_v49 = vadd.f32 %v1119_v45, %v1118_v44  ;;  %v500_v20 = vadd.f32 %v1077_v18, %v499_v50  ;;  %vm2317_vm1 = vcmp.eq.s32.totalorder %v1541_v10, 2 }
  0xa2   : > { %vm2318_vm11 = vcmp.eq.s32.totalorder %v1690_v37, 2  ;;  %v602_v5 = vadd.f32 %v1098_v46, %v601_v51  ;;  %v1121_v21 = vsel %vm681_vm10, 1.0, %v1329_v8  ;;  %v774_v55 = vrot.slane %v397_v41, 4 }
  0xa3   : > { %vm580_vm8 = vmand %vm2318_vm11, %vm2317_vm1  ;;  %v878_v57 = vrot.slane %v877_v52, 1  ;;  %v1100_v58 = vsel %vm2067_vm9, 1.0, %v1329_v8  ;;  %vm2319_vm4 = vcmp.eq.s32.totalorder %v1531_v6, 3  ;;  %vm2320_vm15 = vcmp.eq.s32.totalorder %v1678_v27, 3 }
  0xa4   : > { %vm683_vm2 = vmand %vm2320_vm15, %vm2319_vm4  ;;  %v1122_v59 = vsel %vm682_vm7, 1.0, %v1329_v8  ;;  %v705_v60 = vadd.f32 %v1120_v48, %v704_v49  ;;  %vm2321_vm12 = vcmask 1042434   ;;  %v603_v53 = vadd.f32 %v1099_v3, %v602_v5 }
  0xa5   : > { %v885_v62 = vsel %vm2321_vm12, %v873_v47, %v884_v54  ;;  %v775_v63 = vadd.f32 %v774_v55, %v397_v41  ;;  %v780_v56 = vrot.slane %v500_v20, 4  ;;  %v879_v4 = vadd.f32 %v878_v57, %v877_v52 }
  0xa6   : > { %v1101_v9 = vsel %vm580_vm8, 1.0, %v1329_v8  ;;  %vm2322_vm3 = vcmp.eq.s32.totalorder %v1533_v7, 3  ;;  %v706_v6 = vadd.f32 %v1121_v21, %v705_v60  ;;  %v604_v12 = vadd.f32 %v1100_v58, %v603_v53 }
  0xa7   : > { %vm684_vm9 = vmand %vm668_vm13, %vm2322_vm3  ;;  %v1123_v27 = vsel %vm683_vm2, 1.0, %v1329_v8  ;;  %v776_v13 = vrot.slane %v775_v63, 2  ;;  %v781_v14 = vadd.f32 %v780_v56, %v500_v20  ;;  %vm2323_vm0 = vcmask 1043459  }
  0xa8   : > { %v886_v15 = vsel %vm2323_vm0, %v879_v4, %v885_v62  ;;  %vm2324_vm10 = vcmp.eq.s32.totalorder %v1541_v10, 3  ;;  %vm2325_vm14 = vcmp.eq.s32.totalorder %v1690_v37, 3  ;;  %v707_v17 = vadd.f32 %v1122_v59, %v706_v6  ;;  %vm2327_vm13 = vmmov %vm2316_vm5 }
  0xa9   : > { %vm685_vm6 = vmand %vm2325_vm14, %vm2324_vm10  ;;  %vm2326_vm7 = vcmask 1043456   ;;  %v605_v7 = vadd.f32 %v1101_v9, %v604_v12  ;;  %v1124_v28 = vsel %vm684_vm9, 1.0, %v1329_v8  ;;  %v782_v22 = vrot.slane %v781_v14, 2 }
  0xaa   : > { %v888_v19 = vsel %vm2326_vm7, %v886_v15, 0.0  ;;  %v708_v23 = vadd.f32 %v1123_v27, %v707_v17  ;;  %v777_v24 = vadd.f32 %v776_v13, %v775_v63  ;;  %v1125_v25 = vsel %vm685_vm6, 1.0, %v1329_v8  ;;  %vm2328_vm5 = vmmov %vm2321_vm12 }
  0xab   : > { %889 = vadd.xlane.f32.xlu0 %v888_v19  ;;  %v783_v26 = vadd.f32 %v782_v22, %v781_v14  ;;  %v786_v29 = vrot.slane %v605_v7, 4  ;;  %vm2329_vm1 = vmmov %vm2323_vm0  ;;  %v896_v46 = vlaneseq  ;;  %vm908_vm15 = vcmask 0  }
  0xac   : > { %v709_v30 = vadd.f32 %v1124_v28, %v708_v23  ;;  %v778_v32 = vrot.slane %v777_v24, 1  ;;  %vm2330_vm11 = vmmov %vm2326_vm7 }
  0xad   : > { %v787_v31 = vadd.f32 %v786_v29, %v605_v7  ;;  %v784_v37 = vrot.slane %v783_v26, 1  ;;  %v897_v47 = vshrl.u32 %v896_v46, 7  ;;  %vm2331_vm4 = vmmov %vm2326_vm7 }
  0xae   : > { %v710_v10 = vadd.f32 %v1125_v25, %v709_v30  ;;  %v779_v35 = vadd.f32 %v778_v32, %v777_v24 }
  0xaf   : > { %v788_v16 = vrot.slane %v787_v31, 2  ;;  %v785_v0 = vadd.f32 %v784_v37, %v783_v26  ;;  %vm898_vm8 = vcmp.ge.s32.totalorder %v897_v47, 1 }
  0xb0   : > { %v792_v33 = vrot.slane %v710_v10, 4 }
  0xb1   : > { %v789_v34 = vadd.f32 %v788_v16, %v787_v31  ;;  %v803_v41 = vsel %vm2327_vm13, %v785_v0, %v779_v35 }
  0xb2   : > { %v793_v36 = vadd.f32 %v792_v33, %v710_v10 }
  0xb3   : > { %v790_v61 = vrot.slane %v789_v34, 1 }
  0xb4   : > { %v794_v38 = vrot.slane %v793_v36, 2 }
  0xb5   : > { %v791_v39 = vadd.f32 %v790_v61, %v789_v34 }
  0xb6   : > { %v795_v40 = vadd.f32 %v794_v38, %v793_v36 }
  0xb7   : > { %v805_v1 = vsel %vm2328_vm5, %v791_v39, %v803_v41 }
  0xb8   : > { %v796_v8 = vrot.slane %v795_v40, 1 }
  0xba   : > { %v797_v11 = vadd.f32 %v796_v8, %v795_v40 }
  0xbc   : > { %v807_v42 = vsel %vm2329_vm1, %v797_v11, %v805_v1 }
  0xbd   : > { %v810_v43 = vsel %vm2330_vm11, %v807_v42, 0.0 }
  0xbe   : > { %811 = vadd.xlane.f32.xlu1 %v810_v43 }
 0x104   : > { %v851_v44 = vpop.xlane.xlu0 %850 }
 0x134   : > { %v890_v45 = vpop.xlane.xlu0 %889 }
 0x135   : > { %v892_v2 = vadd.f32 %v890_v45, %v851_v44 }
 0x137   : > { %v893_v18 = vadd.f32 1e-05, %v892_v2 }
 0x139   : > { %1210 = vrcp.f32 %v893_v18 }
 0x146   : > { %v1211_v50 = vpop.eup %1210 }
 0x147   : > { %v812_v51 = vpop.xlane.xlu1 %811 }
 0x148   : > { %v891_v48 = vmul.f32 2.0, %v812_v51 }
 0x14a   : > { %v895_v52 = vmul.f32 %v1211_v50, %v891_v48 }
 0x14c   : > { %v899_v54 = vsel %vm898_vm8, %v895_v52, 0.0 }
 0x14d   : > { %v900_v3 = vsel %vm2331_vm4, %v899_v54, 0.0 }
 0x14e   : > { %v901_v49 = vrot.slane %v900_v3, 4 }
 0x150   : > { %v902_v20 = vadd.f32 %v901_v49, %v900_v3 }
 0x152   : > { %v903_v5 = vrot.slane %v902_v20, 2 }
 0x154   : > { %v904_v21 = vadd.f32 %v903_v5, %v902_v20 }
 0x156   : > { %v905_v55 = vrot.slane %v904_v21, 1 }
 0x158   : > { %v906_v57 = vadd.f32 %v905_v55, %v904_v21 }
 0x15a   : > { %v907_v58 = vmul.f32 0.33333334, %v906_v57 }
 0x15c   : > { %909 = vst.msk [vmem:[%s221_s9] sm:$0x1] %vm908_vm15, %v907_v58 }
 0x15d PF: > { %s18_s14 = sadd.s32 1, %s1322_s14   ;;  %s2332_s9 = smov %s1306_s10 }
 0x15e   : > { %p15_p9 = scmp.ge.s32.totalorder %s18_s14, 4   ;;  %s2333_s10 = smov %s1310_s11 }
 0x15f   : > { %s2334_s11 = smov %s1394_s21  ;;  %s2335_s12 = smov %s1318_s13 }
 0x160   : > { %s2336_s13 = smov %s2338_s16  ;;  %17 = sbr.rel (!%p15_p9) target bundleno = 6 (0x6), region = 101 }
 0x165   :  { %927 = vsyncpa [#allocation6], 1 }
 0x166   :  { %929 = vsyncpa [#allocation6 + $0x1], 1 }
 0x167   :  { %930 = vsyncpa [#allocation8], 1 }
 0x168   :  { %932 = vsyncpa [#allocation8 + $0x1], 1 }

</bundles_post_ra>
